<compile_context>
chip_gen: v7x
topology: tpu7x:2x2x1
jax: 0.10.0
libtpu: 0.0.40
codegen_flags: <defaults>
</compile_context>

<pallas_src>
import functools

import jax
import jax.numpy as jnp
from jax.experimental import pallas as pl
from jax.experimental.pallas import tpu as pltpu


def _round_up(v, m):
    return ((v + m - 1) // m) * m


def _pick_tile(dim, candidates):
    for c in candidates:
        if dim % c == 0:
            return c
    return dim


def _pick_parallel_tile(dim, candidates):
    """Largest candidate dividing `dim` that leaves >= 2 grid steps (keeps both v7x
    TensorCores busy on a 'parallel' axis); falls back to the largest divisor."""
    divs = [c for c in candidates if dim % c == 0]
    if not divs:
        return dim
    for c in divs:
        if dim // c >= 2:
            return c
    return divs[-1]


def _vmem_limit(nbytes, headroom=2 << 20, floor=32 << 20, cap=64 << 20):
    # floor at the usual scoped default, cap at v7x's 64 MiB physical per-TC VMEM.
    return int(min(max(nbytes + headroom, floor), cap))


# ------------------ Propagation, tiled per-step path:  x <- A_hat @ x ------------------
def _propagate_step_kernel(a_ref, x_ref, o_ref, acc_ref):
    @pl.when(pl.program_id(1) == 0)
    def _():
        acc_ref[...] = jnp.zeros_like(acc_ref)

    acc_ref[...] += jnp.dot(a_ref[...], x_ref[...], preferred_element_type=jnp.float32)

    @pl.when(pl.program_id(1) == pl.num_programs(1) - 1)
    def _():
        o_ref[...] = acc_ref[...].astype(o_ref.dtype)


def propagate_step(a_hat_bf16, x_bf16, out_dtype):
    """One step with the feature tile spanning the whole padded width, so A_hat is streamed
    from HBM exactly once per step.  x is bf16 in / bf16 out (f32 out on the final step)."""
    Np, Fp = x_bf16.shape
    tm = _pick_parallel_tile(Np, (512, 256, 128))
    tk = _pick_tile(Np, (1024, 512, 256, 128))
    grid = (Np // tm, Np // tk)

    out_bytes = jnp.dtype(out_dtype).itemsize
    vmem = (2 * tm * tk * 2          # A tiles (bf16, double-buffered)
            + 2 * tk * Fp * 2        # x stripes (bf16, double-buffered)
            + 2 * tm * Fp * out_bytes
            + tm * Fp * 4)           # f32 accumulator scratch
    cost = pl.CostEstimate(
        flops=2 * Np * Np * Fp,
        transcendentals=0,
        bytes_accessed=(Np * Np * 2                    # A_hat read once
                        + (Np // tm) * Np * Fp * 2     # x re-read per row tile
                        + Np * Fp * out_bytes))        # output written once
    return pl.pallas_call(
        _propagate_step_kernel,
        out_shape=jax.ShapeDtypeStruct((Np, Fp), out_dtype),
        grid_spec=pltpu.PrefetchScalarGridSpec(
            num_scalar_prefetch=0,
            grid=grid,
            in_specs=[
                pl.BlockSpec((tm, tk), lambda i, k: (i, k)),   # A_hat tile (bf16)
                pl.BlockSpec((tk, Fp), lambda i, k: (k, 0)),   # x stripe, full feature width
            ],
            out_specs=pl.BlockSpec((tm, Fp), lambda i, k: (i, 0)),
            scratch_shapes=[pltpu.VMEM((tm, Fp), jnp.float32)],
        ),
        compiler_params=pltpu.CompilerParams(
            dimension_semantics=("parallel", "arbitrary"),
            vmem_limit_bytes=_vmem_limit(vmem)),
        cost_estimate=cost,
    )(a_hat_bf16, x_bf16)


# ------------- Propagation, fused small-graph path: A_hat resident, K steps in one call -------------
def _make_propagate_fused_kernel(K, tm):
    def kernel(a_ref, x0_ref, o_ref, xa_ref, xb_ref):
        n_rows = a_ref.shape[0] // tm
        bufs = (xa_ref, xb_ref)
        src = x0_ref                              # first step reads the input block directly
        for step in range(K):                     # K is a static Python int
            last = step == K - 1
            dst = o_ref if last else bufs[step % 2]

            def row_body(i, carry, src=src, dst=dst, last=last):
                r = pl.multiple_of(i * tm, tm)
                res = jnp.dot(a_ref[pl.ds(r, tm), :], src[...],
                              preferred_element_type=jnp.float32)
                dst[pl.ds(r, tm), :] = res if last else res.astype(dst.dtype)
                return carry

            jax.lax.fori_loop(0, n_rows, row_body, 0)
            if not last:
                src = dst
    return kernel


def _fused_vmem_bytes(Np, Fp):
    # inputs/outputs counted double-buffered (conservative) + two bf16 ping-pong scratches
    return (2 * Np * Np * 2        # A_hat resident (bf16)
            + 2 * Np * Fp * 2      # x0 (bf16)
            + 2 * Np * Fp * 4      # f32 output
            + 2 * Np * Fp * 2)     # ping-pong scratch


def propagate_fused(a_hat_bf16, x_bf16, K):
    Np, Fp = x_bf16.shape
    tm = _pick_tile(Np, (512, 256, 128))
    vmem = _fused_vmem_bytes(Np, Fp)
    cost = pl.CostEstimate(
        flops=2 * K * Np * Np * Fp,
        transcendentals=0,
        bytes_accessed=Np * Np * 2 + Np * Fp * 2 + Np * Fp * 4)
    return pl.pallas_call(
        _make_propagate_fused_kernel(K, tm),
        out_shape=jax.ShapeDtypeStruct((Np, Fp), jnp.float32),
        grid_spec=pltpu.PrefetchScalarGridSpec(
            num_scalar_prefetch=0,
            grid=(1,),
            in_specs=[
                pl.BlockSpec((Np, Np), lambda i: (0, 0)),   # A_hat resident (bf16)
                pl.BlockSpec((Np, Fp), lambda i: (0, 0)),   # x0 resident (bf16)
            ],
            out_specs=pl.BlockSpec((Np, Fp), lambda i: (0, 0)),
            scratch_shapes=[pltpu.VMEM((Np, Fp), jnp.bfloat16),
                            pltpu.VMEM((Np, Fp), jnp.bfloat16)],
        ),
        compiler_params=pltpu.CompilerParams(
            dimension_semantics=("arbitrary",),
            vmem_limit_bytes=_vmem_limit(vmem)),
        cost_estimate=cost,
    )(a_hat_bf16, x_bf16)


def propagate(a_hat_bf16, x_bf16, K, force_tiled=False):
    if K <= 0:
        return x_bf16.astype(jnp.float32)
    Np, Fp = x_bf16.shape
    fits_fused = (not force_tiled
                  and _fused_vmem_bytes(Np, Fp) <= (20 << 20)   # conservative VMEM budget
                  and Np * Fp * 2 <= (4 << 20))                 # keep in-kernel operands modest
    if fits_fused:
        return propagate_fused(a_hat_bf16, x_bf16, K)
    # x_{k+1} depends on all of x_k: one tiled pallas_call per step, bf16 ping-pong via HBM.
    x = x_bf16
    for k in range(K):
        out_dtype = jnp.float32 if k == K - 1 else jnp.bfloat16
        x = propagate_step(a_hat_bf16, x, out_dtype)
    return x


# ------------------- Transform: fused lin1 -> relu -> lin2 -> log_softmax -------------------
def _transform_kernel(x_ref, w1_ref, b1_ref, w2_ref, b2_ref, o_ref):
    xb = x_ref[...].astype(jnp.bfloat16)                          # bf16 MXU operands, f32 acc
    h = jnp.dot(xb, w1_ref[...], preferred_element_type=jnp.float32) + b1_ref[...]
    h = jnp.maximum(h, 0.0)
    z = jnp.dot(h.astype(jnp.bfloat16), w2_ref[...],
                preferred_element_type=jnp.float32) + b2_ref[...]
    # log_softmax over dim=1; padded columns carry a -1e30 f32 bias -> exp ~ 0.
    m = jnp.max(z, axis=1, keepdims=True)
    lse = jnp.log(jnp.sum(jnp.exp(z - m), axis=1, keepdims=True)) + m
    o_ref[...] = z - lse


def transform(x, w1_bf16, b1, w2_bf16, b2):
    Mp, Fin = x.shape
    Fout = w2_bf16.shape[1]
    tm = _pick_parallel_tile(Mp, (512, 256, 128))
    grid = (Mp // tm,)
    vmem = (2 * tm * Fin * 4          # x row tiles (f32)
            + 2 * Fin * Fin * 2       # w1 resident (bf16)
            + 2 * Fin * Fout * 2      # w2 resident (bf16)
            + 2 * 8 * Fin * 4 + 2 * 8 * Fout * 4   # biases (sublane padded)
            + 2 * tm * Fout * 4)      # output row tiles
    cost = pl.CostEstimate(
        flops=2 * Mp * Fin * Fin + 2 * Mp * Fin * Fout,
        transcendentals=Mp * Fout,
        bytes_accessed=(Mp * Fin * 4 + Fin * Fin * 2 + Fin * Fout * 2 + Mp * Fout * 4))
    return pl.pallas_call(
        _transform_kernel,
        out_shape=jax.ShapeDtypeStruct((Mp, Fout), jnp.float32),
        grid_spec=pltpu.PrefetchScalarGridSpec(
            num_scalar_prefetch=0,
            grid=grid,
            in_specs=[
                pl.BlockSpec((tm, Fin), lambda i: (i, 0)),     # row tile of x
                pl.BlockSpec((Fin, Fin), lambda i: (0, 0)),    # w1 resident (bf16)
                pl.BlockSpec((1, Fin), lambda i: (0, 0)),      # b1 resident (f32)
                pl.BlockSpec((Fin, Fout), lambda i: (0, 0)),   # w2 resident (bf16)
                pl.BlockSpec((1, Fout), lambda i: (0, 0)),     # b2 resident (f32)
            ],
            out_specs=pl.BlockSpec((tm, Fout), lambda i: (i, 0)),
        ),
        compiler_params=pltpu.CompilerParams(
            dimension_semantics=("parallel",),
            vmem_limit_bytes=_vmem_limit(vmem)),
        cost_estimate=cost,
    )(x, w1_bf16, b1, w2_bf16, b2)


# --------------------------------------- Glue (plain JAX) -------------------------------------
def build_normalized_adjacency(edge_index, num_nodes):
    """Dense GCN/SGC-normalized adjacency with self loops: D^-1/2 (A + I) D^-1/2."""
    src, dst = edge_index[0], edge_index[1]
    a = jnp.zeros((num_nodes, num_nodes), jnp.float32)
    a = a.at[src, dst].set(1.0)
    a = a.at[dst, src].set(1.0)                      # treat graph as undirected
    diag = jnp.arange(num_nodes)
    a = a.at[diag, diag].set(1.0)                    # self loops (set, never 2.0)
    deg = jnp.sum(a, axis=1)
    d_inv_sqrt = jnp.where(deg > 0, 1.0 / jnp.sqrt(deg), 0.0)
    return a * d_inv_sqrt[:, None] * d_inv_sqrt[None, :]


def sgc_forward(x, edge_index, params, K, force_tiled=False):
    N, Fin = x.shape
    Fout = params["b2"].shape[1]

    Np = _round_up(N, 256)           # 256-padded so tiles never fall back to 128
    Fp = _round_up(Fin, 256)
    Fop = _round_up(Fout, 128)

    a_hat = build_normalized_adjacency(edge_index, N)
    a_pad = jnp.zeros((Np, Np), jnp.float32).at[:N, :N].set(a_hat).astype(jnp.bfloat16)

    # x carried in bf16 through propagation; cast exactly once here.
    x_pad = jnp.zeros((Np, Fp), jnp.bfloat16).at[:N, :Fin].set(x.astype(jnp.bfloat16))

    # propagate (PUPropagate): x <- A_hat^K x   (final step emits f32)
    x_prop = propagate(a_pad, x_pad, K, force_tiled=force_tiled)

    # cluster (identity compression)
    index = jnp.arange(N, dtype=jnp.int32)

    # bf16 weights (halved DMA + resident VMEM), f32 biases; padded logit columns get -1e30.
    w1 = jnp.zeros((Fp, Fp), jnp.float32).at[:Fin, :Fin].set(params["w1_t"]).astype(jnp.bfloat16)
    b1 = jnp.zeros((1, Fp), jnp.float32).at[:, :Fin].set(params["b1"])
    w2 = jnp.zeros((Fp, Fop), jnp.float32).at[:Fin, :Fout].set(params["w2_t"]).astype(jnp.bfloat16)
    b2 = jnp.full((1, Fop), -1e30, jnp.float32).at[:, :Fout].set(params["b2"])

    logp = transform(x_prop, w1, b1, w2, b2)

    # slice off padding; reconstruct = row gather by cluster index (commutes with log_softmax)
    logp = logp[:N, :Fout]
    return jnp.take(logp, index, axis=0)


def sgc_reference(x, edge_index, params, K):
    """Pure-JAX reference mirroring the kernels' bf16 operand rounding."""
    f32 = jnp.float32
    N = x.shape[0]
    a = build_normalized_adjacency(edge_index, N).astype(jnp.bfloat16).astype(f32)
    h = x.astype(jnp.bfloat16).astype(f32)
    for k in range(K):
        h = a @ h
        if k < K - 1:
            h = h.astype(jnp.bfloat16).astype(f32)
    w1 = params["w1_t"].astype(jnp.bfloat16).astype(f32)
    w2 = params["w2_t"].astype(jnp.bfloat16).astype(f32)
    h1 = jnp.maximum(h.astype(jnp.bfloat16).astype(f32) @ w1 + params["b1"], 0.0)
    z = h1.astype(jnp.bfloat16).astype(f32) @ w2 + params["b2"]
    return jax.nn.log_softmax(z, axis=1)


def init_params(key, in_features, out_features):
    k1, k2, k3, k4 = jax.random.split(key, 4)
    # PyTorch Linear default: U(-1/sqrt(fan_in), 1/sqrt(fan_in))
    bnd = 1.0 / (in_features ** 0.5)
    w1 = jax.random.uniform(k1, (in_features, in_features), jnp.float32, -bnd, bnd)
    b1 = jax.random.uniform(k2, (1, in_features), jnp.float32, -bnd, bnd)
    w2 = jax.random.uniform(k3, (out_features, in_features), jnp.float32, -bnd, bnd)
    b2 = jax.random.uniform(k4, (1, out_features), jnp.float32, -bnd, bnd)
    # kernels consume transposed weights (x @ W^T)
    return {"w1_t": w1.T, "b1": b1, "w2_t": w2.T, "b2": b2}


if __name__ == "__main__":
    N, IN_F, OUT_F, K, E = 16, 32, 8, 3, 40

    key = jax.random.PRNGKey(0)
    kx, ke, kp = jax.random.split(key, 3)

    x = jax.random.normal(kx, (N, IN_F), jnp.float32)
    edge_index = jax.random.randint(ke, (2, E), 0, N, jnp.int32)
    params = init_params(kp, IN_F, OUT_F)

    ref = sgc_reference(x, edge_index, params, K)

    # Fast path: A_hat resident in VMEM, all K steps fused into one pallas_call.
    out_fused = jax.jit(functools.partial(sgc_forward, K=K))(x, edge_index, params)
    jax.block_until_ready(out_fused)

    # Fallback path: tiled per-step propagation (exercised so both code paths are covered).
    out_tiled = jax.jit(functools.partial(sgc_forward, K=K, force_tiled=True))(x, edge_index, params)
    jax.block_until_ready(out_tiled)

    for out in (out_fused, out_tiled):
        assert out.shape == (N, OUT_F)
        # rows of log_softmax must sum to 1 in prob space
        assert jnp.allclose(jnp.sum(jnp.exp(out), axis=1), 1.0, atol=1e-4)
        assert jnp.allclose(out, ref, atol=2e-2), float(jnp.max(jnp.abs(out - ref)))
    print("KERNEL_OK")
</pallas_src>

<mosaic_0001>
module attributes {stable_mosaic.version = 11 : i64} {
  func.func @_transform_kernel(%arg0: i32, %arg1: memref<128x256xf32, #tpu.memory_space<vmem>>, %arg2: memref<256x256xbf16, #tpu.memory_space<vmem>>, %arg3: memref<1x256xf32, #tpu.memory_space<vmem>>, %arg4: memref<256x128xbf16, #tpu.memory_space<vmem>>, %arg5: memref<1x128xf32, #tpu.memory_space<vmem>>, %arg6: memref<128x128xf32, #tpu.memory_space<vmem>>) attributes {dimension_semantics = [#tpu.dimension_semantics<parallel>], iteration_bounds = array<i64: 2>, scalar_prefetch = 0 : i64, scratch_operands = 0 : i64, tpu.core_type = #tpu.core_type<tc>, window_params = [{transform_indices = @transform_0, window_bounds = array<i64: 128, 256>}, {pipeline_mode = #tpu.pipeline_mode<synchronous>, transform_indices = @transform_1, window_bounds = array<i64: 256, 256>}, {pipeline_mode = #tpu.pipeline_mode<synchronous>, transform_indices = @transform_2, window_bounds = array<i64: 1, 256>}, {pipeline_mode = #tpu.pipeline_mode<synchronous>, transform_indices = @transform_3, window_bounds = array<i64: 256, 128>}, {pipeline_mode = #tpu.pipeline_mode<synchronous>, transform_indices = @transform_4, window_bounds = array<i64: 1, 128>}, {transform_indices = @transform_5, window_bounds = array<i64: 128, 128>}]} {
    %c0 = arith.constant 0 : index
    %c0_0 = arith.constant 0 : index
    %0 = vector.load %arg1[%c0, %c0_0] : memref<128x256xf32, #tpu.memory_space<vmem>>, vector<128x256xf32>
    %1 = arith.truncf %0 : vector<128x256xf32> to vector<128x256xbf16>
    %c0_1 = arith.constant 0 : index
    %c0_2 = arith.constant 0 : index
    %2 = vector.load %arg2[%c0_1, %c0_2] : memref<256x256xbf16, #tpu.memory_space<vmem>>, vector<256x256xbf16>
    %cst = arith.constant dense<0.000000e+00> : vector<128x256xf32>
    %3 = tpu.matmul %1, %2, %cst {dimension_numbers = #tpu.dot_dimension_numbers<[1], [0], [0], [1], [0, 0, 1, 1], [], []>} : vector<128x256xbf16>, vector<256x256xbf16>, vector<128x256xf32> -> vector<128x256xf32>
    %c0_3 = arith.constant 0 : index
    %c0_4 = arith.constant 0 : index
    %4 = vector.load %arg3[%c0_3, %c0_4] : memref<1x256xf32, #tpu.memory_space<vmem>>, vector<1x256xf32>
    %5 = vector.broadcast %4 : vector<1x256xf32> to vector<128x256xf32>
    %6 = arith.addf %3, %5 : vector<128x256xf32>
    %cst_5 = arith.constant 0.000000e+00 : f32
    %7 = vector.broadcast %cst_5 : f32 to vector<128x256xf32>
    %8 = arith.maximumf %6, %7 : vector<128x256xf32>
    %9 = arith.truncf %8 : vector<128x256xf32> to vector<128x256xbf16>
    %c0_6 = arith.constant 0 : index
    %c0_7 = arith.constant 0 : index
    %10 = vector.load %arg4[%c0_6, %c0_7] : memref<256x128xbf16, #tpu.memory_space<vmem>>, vector<256x128xbf16>
    %cst_8 = arith.constant dense<0.000000e+00> : vector<128x128xf32>
    %11 = tpu.matmul %9, %10, %cst_8 {dimension_numbers = #tpu.dot_dimension_numbers<[1], [0], [0], [1], [0, 0, 1, 1], [], []>} : vector<128x256xbf16>, vector<256x128xbf16>, vector<128x128xf32> -> vector<128x128xf32>
    %c0_9 = arith.constant 0 : index
    %c0_10 = arith.constant 0 : index
    %12 = vector.load %arg5[%c0_9, %c0_10] : memref<1x128xf32, #tpu.memory_space<vmem>>, vector<1x128xf32>
    %13 = vector.broadcast %12 : vector<1x128xf32> to vector<128x128xf32>
    %14 = arith.addf %11, %13 : vector<128x128xf32>
    %cst_11 = arith.constant dense<0xFF800000> : vector<128xf32>
    %15 = vector.multi_reduction <maximumf>, %14, %cst_11 [1] : vector<128x128xf32> to vector<128xf32>
    %16 = vector.shape_cast %15 : vector<128xf32> to vector<128x1xf32>
    %17 = vector.broadcast %16 : vector<128x1xf32> to vector<128x128xf32>
    %18 = arith.subf %14, %17 : vector<128x128xf32>
    %19 = math.exp %18 : vector<128x128xf32>
    %cst_12 = arith.constant dense<0.000000e+00> : vector<128xf32>
    %20 = vector.multi_reduction <add>, %19, %cst_12 [1] : vector<128x128xf32> to vector<128xf32>
    %21 = vector.shape_cast %20 : vector<128xf32> to vector<128x1xf32>
    %22 = math.log %21 : vector<128x1xf32>
    %23 = arith.addf %22, %16 : vector<128x1xf32>
    %24 = vector.broadcast %23 : vector<128x1xf32> to vector<128x128xf32>
    %25 = arith.subf %14, %24 : vector<128x128xf32>
    %c0_13 = arith.constant 0 : index
    %c0_14 = arith.constant 0 : index
    %26 = vector.load %arg6[%c0_13, %c0_14] : memref<128x128xf32, #tpu.memory_space<vmem>>, vector<128x128xf32>
    tpu.vector_store %arg6[%c0_13, %c0_14], %25 {strides = array<i32>} : memref<128x128xf32, #tpu.memory_space<vmem>>, vector<128x128xf32>,
    return
  }
  func.func @transform_0(%arg0: i32) -> (i32, i32) {
    %c0_i32 = arith.constant 0 : i32
    %c0_i32_0 = arith.constant 0 : i32
    return %arg0, %c0_i32 : i32, i32
  }
  func.func @transform_1(%arg0: i32) -> (i32, i32) {
    %c0_i32 = arith.constant 0 : i32
    %c0_i32_0 = arith.constant 0 : i32
    %c0_i32_1 = arith.constant 0 : i32
    return %c0_i32, %c0_i32_0 : i32, i32
  }
  func.func @transform_2(%arg0: i32) -> (i32, i32) {
    %c0_i32 = arith.constant 0 : i32
    %c0_i32_0 = arith.constant 0 : i32
    %c0_i32_1 = arith.constant 0 : i32
    return %c0_i32, %c0_i32_0 : i32, i32
  }
  func.func @transform_3(%arg0: i32) -> (i32, i32) {
    %c0_i32 = arith.constant 0 : i32
    %c0_i32_0 = arith.constant 0 : i32
    %c0_i32_1 = arith.constant 0 : i32
    return %c0_i32, %c0_i32_0 : i32, i32
  }
  func.func @transform_4(%arg0: i32) -> (i32, i32) {
    %c0_i32 = arith.constant 0 : i32
    %c0_i32_0 = arith.constant 0 : i32
    %c0_i32_1 = arith.constant 0 : i32
    return %c0_i32, %c0_i32_0 : i32, i32
  }
  func.func @transform_5(%arg0: i32) -> (i32, i32) {
    %c0_i32 = arith.constant 0 : i32
    %c0_i32_0 = arith.constant 0 : i32
    return %arg0, %c0_i32 : i32, i32
  }
}

module attributes {stable_mosaic.version = 11 : i64} {
  func.func @kernel(%arg0: i32, %arg1: memref<256x256xbf16, #tpu.memory_space<vmem>>, %arg2: memref<256x256xbf16, #tpu.memory_space<vmem>>, %arg3: memref<256x256xf32, #tpu.memory_space<vmem>>, %arg4: memref<256x256xbf16, #tpu.memory_space<vmem>>, %arg5: memref<256x256xbf16, #tpu.memory_space<vmem>>) attributes {dimension_semantics = [#tpu.dimension_semantics<arbitrary>], iteration_bounds = array<i64: 1>, scalar_prefetch = 0 : i64, scratch_operands = 2 : i64, tpu.core_type = #tpu.core_type<tc>, window_params = [{pipeline_mode = #tpu.pipeline_mode<synchronous>, transform_indices = @transform_0, window_bounds = array<i64: 256, 256>}, {pipeline_mode = #tpu.pipeline_mode<synchronous>, transform_indices = @transform_1, window_bounds = array<i64: 256, 256>}, {pipeline_mode = #tpu.pipeline_mode<synchronous>, transform_indices = @transform_2, window_bounds = array<i64: 256, 256>}]} {
    %c0_i32 = arith.constant 0 : i32
    %c256_i32 = arith.constant 256 : i32
    %0 = arith.muli %c0_i32, %c256_i32 : i32
    %1 = tpu.assume_multiple %0, 256 : i32
    %2 = arith.index_cast %1 : i32 to index
    %c0 = arith.constant 0 : index
    %3 = vector.load %arg1[%2, %c0] : memref<256x256xbf16, #tpu.memory_space<vmem>>, vector<256x256xbf16>
    %c0_0 = arith.constant 0 : index
    %c0_1 = arith.constant 0 : index
    %4 = vector.load %arg2[%c0_0, %c0_1] : memref<256x256xbf16, #tpu.memory_space<vmem>>, vector<256x256xbf16>
    %cst = arith.constant dense<0.000000e+00> : vector<256x256xf32>
    %5 = tpu.matmul %3, %4, %cst {dimension_numbers = #tpu.dot_dimension_numbers<[1], [0], [0], [1], [0, 0, 1, 1], [], []>} : vector<256x256xbf16>, vector<256x256xbf16>, vector<256x256xf32> -> vector<256x256xf32>
    %6 = arith.truncf %5 : vector<256x256xf32> to vector<256x256xbf16>
    %7 = arith.index_cast %1 : i32 to index
    %c0_2 = arith.constant 0 : index
    %8 = vector.load %arg4[%7, %c0_2] : memref<256x256xbf16, #tpu.memory_space<vmem>>, vector<256x256xbf16>
    tpu.vector_store %arg4[%7, %c0_2], %6 {strides = array<i32>} : memref<256x256xbf16, #tpu.memory_space<vmem>>, vector<256x256xbf16>,
    %c1_i32 = arith.constant 1 : i32
    %c0_i32_3 = arith.constant 0 : i32
    %c256_i32_4 = arith.constant 256 : i32
    %9 = arith.muli %c0_i32_3, %c256_i32_4 : i32
    %10 = tpu.assume_multiple %9, 256 : i32
    %11 = arith.index_cast %10 : i32 to index
    %c0_5 = arith.constant 0 : index
    %12 = vector.load %arg1[%11, %c0_5] : memref<256x256xbf16, #tpu.memory_space<vmem>>, vector<256x256xbf16>
    %c0_6 = arith.constant 0 : index
    %c0_7 = arith.constant 0 : index
    %13 = vector.load %arg4[%c0_6, %c0_7] : memref<256x256xbf16, #tpu.memory_space<vmem>>, vector<256x256xbf16>
    %cst_8 = arith.constant dense<0.000000e+00> : vector<256x256xf32>
    %14 = tpu.matmul %12, %13, %cst_8 {dimension_numbers = #tpu.dot_dimension_numbers<[1], [0], [0], [1], [0, 0, 1, 1], [], []>} : vector<256x256xbf16>, vector<256x256xbf16>, vector<256x256xf32> -> vector<256x256xf32>
    %15 = arith.truncf %14 : vector<256x256xf32> to vector<256x256xbf16>
    %16 = arith.index_cast %10 : i32 to index
    %c0_9 = arith.constant 0 : index
    %17 = vector.load %arg5[%16, %c0_9] : memref<256x256xbf16, #tpu.memory_space<vmem>>, vector<256x256xbf16>
    tpu.vector_store %arg5[%16, %c0_9], %15 {strides = array<i32>} : memref<256x256xbf16, #tpu.memory_space<vmem>>, vector<256x256xbf16>,
    %c1_i32_10 = arith.constant 1 : i32
    %c0_i32_11 = arith.constant 0 : i32
    %c256_i32_12 = arith.constant 256 : i32
    %18 = arith.muli %c0_i32_11, %c256_i32_12 : i32
    %19 = tpu.assume_multiple %18, 256 : i32
    %20 = arith.index_cast %19 : i32 to index
    %c0_13 = arith.constant 0 : index
    %21 = vector.load %arg1[%20, %c0_13] : memref<256x256xbf16, #tpu.memory_space<vmem>>, vector<256x256xbf16>
    %c0_14 = arith.constant 0 : index
    %c0_15 = arith.constant 0 : index
    %22 = vector.load %arg5[%c0_14, %c0_15] : memref<256x256xbf16, #tpu.memory_space<vmem>>, vector<256x256xbf16>
    %cst_16 = arith.constant dense<0.000000e+00> : vector<256x256xf32>
    %23 = tpu.matmul %21, %22, %cst_16 {dimension_numbers = #tpu.dot_dimension_numbers<[1], [0], [0], [1], [0, 0, 1, 1], [], []>} : vector<256x256xbf16>, vector<256x256xbf16>, vector<256x256xf32> -> vector<256x256xf32>
    %24 = arith.index_cast %19 : i32 to index
    %c0_17 = arith.constant 0 : index
    %25 = vector.load %arg3[%24, %c0_17] : memref<256x256xf32, #tpu.memory_space<vmem>>, vector<256x256xf32>
    tpu.vector_store %arg3[%24, %c0_17], %23 {strides = array<i32>} : memref<256x256xf32, #tpu.memory_space<vmem>>, vector<256x256xf32>,
    %c1_i32_18 = arith.constant 1 : i32
    return
  }
  func.func @transform_0(%arg0: i32) -> (i32, i32) {
    %c0_i32 = arith.constant 0 : i32
    %c0_i32_0 = arith.constant 0 : i32
    %c0_i32_1 = arith.constant 0 : i32
    return %c0_i32, %c0_i32_0 : i32, i32
  }
  func.func @transform_1(%arg0: i32) -> (i32, i32) {
    %c0_i32 = arith.constant 0 : i32
    %c0_i32_0 = arith.constant 0 : i32
    %c0_i32_1 = arith.constant 0 : i32
    return %c0_i32, %c0_i32_0 : i32, i32
  }
  func.func @transform_2(%arg0: i32) -> (i32, i32) {
    %c0_i32 = arith.constant 0 : i32
    %c0_i32_0 = arith.constant 0 : i32
    %c0_i32_1 = arith.constant 0 : i32
    return %c0_i32, %c0_i32_0 : i32, i32
  }
}

</mosaic_0001>

<bundles_post_ra>
// kernel: sgc_forward.3
= control target key start
LH: loop header
LB: loop body
LE: loop exit
PB: predicated region body
PF: predicated region fallthrough
CT: control target
= control target key end

     0   :  { %s1425_s18 = smov 0   ;;  %s1846_s0 = inlined_call_operand.vmem [shape: f32[256,256], index: 0, kind: input, shape index: {}]   ;;  %s1847_s1 = inlined_call_operand.vmem [shape: bf16[256,256], index: 1, kind: input, shape index: {}]   ;;  %s1848_s2 = inlined_call_operand.vmem [shape: f32[1,256], index: 2, kind: input, shape index: {}]   ;;  %s1849_s3 = inlined_call_operand.vmem [shape: bf16[256,128], index: 3, kind: input, shape index: {}]   ;;  %s1850_s4 = inlined_call_operand.vmem [shape: f32[1,128], index: 4, kind: input, shape index: {}]   ;;  %s1851_s5 = inlined_call_operand.vmem [shape: f32[256,128], index: 5, kind: output, shape index: {}]  }
   0x1 LB: > { %s1125_s19 = sadd.s32 4294967295, %s1393_s18   ;;  %p1129_p0 = scmp.ge.s32.totalorder %s1393_s18, 1  ;;  %s1393_s18 = sphi %s1425_s18, %s15_s18  }
   0x2   : > { %p189_p1 = scmp.lt.s32.totalorder %s1393_s18, 3 }
   0x4   : > { %p190_p2 = pnand %p1129_p0, %p189_p1 }
   0x5   : > { %v1259_v0 = vld [vmem:[%s1847_s1 + $0x4] ss:$8 sps:$4 sm:$0xff] (!%p190_p2)   ;;  %v1261_v1 = vld [vmem:[%s1847_s1] ss:$8 sps:$4 sm:$0xff] (!%p190_p2)   ;;  %v1262_v2 = vld [vmem:[%s1847_s1 + $0x14] ss:$8 sps:$4 sm:$0xff] (!%p190_p2)  }
   0x6   : > { %193 = sbr.rel (%p190_p2) target bundleno = 884 (0x374), region = 40  ;;  %484 = vmatprep.subr.bf16.mxu0 (!%p190_p2), %v1259_v0  ;;  %v1264_v3 = vld [vmem:[%s1847_s1 + $0x10] ss:$8 sps:$4 sm:$0xff] (!%p190_p2)   ;;  %v1265_v4 = vld [vmem:[%s1847_s1 + $0x24] ss:$8 sps:$4 sm:$0xff] (!%p190_p2)   ;;  %s1130_s30 = sshll.u32 (!%p190_p2), %s1125_s19, 4 }
   0x7   : > { %485 = vmatpush1.bf16.msra.mxu0 (!%p190_p2), %v1261_v1  ;;  %v1267_v5 = vld [vmem:[%s1847_s1 + $0x20] ss:$8 sps:$4 sm:$0xff] (!%p190_p2)   ;;  %p219_p3 = scmp.lt.s32.totalorder (!%p190_p2), %s1130_s30, 31  ;;  %v1268_v6 = vld [vmem:[%s1847_s1 + $0x34] ss:$8 sps:$4 sm:$0xff] (!%p190_p2)  }
   0x8   : > { %486 = vmatprep.subr.bf16.mxu0 (!%p190_p2), %v1262_v2  ;;  %v1270_v7 = vld [vmem:[%s1847_s1 + $0x30] ss:$8 sps:$4 sm:$0xff] (!%p190_p2)   ;;  %v1271_v8 = vld [vmem:[%s1847_s1 + $0x44] ss:$8 sps:$4 sm:$0xff] (!%p190_p2)   ;;  %v1273_v9 = vld [vmem:[%s1847_s1 + $0x40] ss:$8 sps:$4 sm:$0xff] (!%p190_p2)  }
   0x9   : > { %v1274_v10 = vld [vmem:[%s1847_s1 + $0x54] ss:$8 sps:$4 sm:$0xff] (!%p190_p2)   ;;  %v1276_v11 = vld [vmem:[%s1847_s1 + $0x50] ss:$8 sps:$4 sm:$0xff] (!%p190_p2)   ;;  %v1277_v12 = vld [vmem:[%s1847_s1 + $0x64] ss:$8 sps:$4 sm:$0xff] (!%p190_p2)  }
   0xa   : > { %v1279_v16 = vld [vmem:[%s1847_s1 + $0x60] ss:$8 sps:$4 sm:$0xff] (!%p190_p2)   ;;  %v1280_v17 = vld [vmem:[%s1847_s1 + $0x74] ss:$8 sps:$4 sm:$0xff] (!%p190_p2)   ;;  %v1282_v18 = vld [vmem:[%s1847_s1 + $0x70] ss:$8 sps:$4 sm:$0xff] (!%p190_p2)  }
   0xb   : > { %487 = vmatpush1.bf16.msra.mxu0 (!%p190_p2), %v1264_v3  ;;  %v1283_v19 = vld [vmem:[%s1847_s1 + $0x84] ss:$8 sps:$4 sm:$0xff] (!%p190_p2)   ;;  %v1285_v20 = vld [vmem:[%s1847_s1 + $0x80] ss:$8 sps:$4 sm:$0xff] (!%p190_p2)   ;;  %v1286_v21 = vld [vmem:[%s1847_s1 + $0x94] ss:$8 sps:$4 sm:$0xff] (!%p190_p2)  }
   0xc   : > { %488 = vmatprep.subr.bf16.mxu0 (!%p190_p2), %v1265_v4  ;;  %v1307_v22 = vld [vmem:[%s1849_s3 + $0x40] sm:$0xff] (!%p190_p2)   ;;  %v1288_v23 = vld [vmem:[%s1847_s1 + $0x90] ss:$8 sps:$4 sm:$0xff] (!%p190_p2)   ;;  %v1309_v26 = vld [vmem:[%s1849_s3 + $0x48] sm:$0xff] (!%p190_p2)  }
   0xd   : > { %s1853_s30 = smov (!%p219_p3, %s1130_s30), 31  ;;  %v1308_v24 = vld [vmem:[%s1849_s3] sm:$0xff]   ;;  %1187 = vmatprep.subr.bf16.mxu1 %v1307_v22  ;;  %v1310_v27 = vld [vmem:[%s1849_s3 + $0x8] sm:$0xff]   ;;  %v1311_v28 = vld [vmem:[%s1849_s3 + $0x50] sm:$0xff]  }
   0xe   : > { %s1186_s16 = sshll.u32 %s1853_s30, 4  ;;  %v1289_v25 = vld [vmem:[%s1847_s1 + $0xa4] ss:$8 sps:$4 sm:$0xff]   ;;  %1188 = vmatpush3.bf16.msra.mxu1 %v1308_v24  ;;  %v1291_v29 = vld [vmem:[%s1847_s1 + $0xa0] ss:$8 sps:$4 sm:$0xff]   ;;  %v1312_v31 = vld [vmem:[%s1849_s3 + $0x10] sm:$0xff]  }
   0xf   : > { %489 = vmatpush1.bf16.msra.mxu0 %v1267_v5  ;;  %s1472_s22 = scalar_lea.vmem %s1846_s0, %s1186_s16  ;;  %1189 = vmatprep.subr.bf16.mxu1 %v1309_v26  ;;  %v1292_v30 = vld [vmem:[%s1847_s1 + $0xb4] ss:$8 sps:$4 sm:$0xff]   ;;  %v1294_v33 = vld [vmem:[%s1847_s1 + $0xb0] ss:$8 sps:$4 sm:$0xff]   ;;  %v1295_v34 = vld [vmem:[%s1847_s1 + $0xc4] ss:$8 sps:$4 sm:$0xff]  }
  0x10   : > { %490 = vmatprep.subr.bf16.mxu0 %v1268_v6  ;;  %v233_v13 = vld [vmem:[%s1472_s22 + $0x8] sm:$0xff]  ;;  %v235_v14 = vld [vmem:[%s1472_s22 + $0x18] sm:$0xff]  ;;  %v1315_v36 = vld [vmem:[%s1849_s3 + $0x60] sm:$0xff]   ;;  %s1134_s10 = sshll.u32 %s1853_s30, 3 }
  0x11   : > { %v265_v15 = vpack.c.bf16 %v235_v14, %v233_v13  ;;  %v1313_v32 = vld [vmem:[%s1849_s3 + $0x58] sm:$0xff]   ;;  %v1297_v37 = vld [vmem:[%s1847_s1 + $0xc0] ss:$8 sps:$4 sm:$0xff]   ;;  %v1301_v42 = vld [vmem:[%s1847_s1 + $0xe4] ss:$8 sps:$4 sm:$0xff]   ;;  %s1794_s13 = scalar_lea.vmem %s1851_s5, %s1134_s10 }
  0x12   : > { %1190 = vmatpush3.bf16.msra.mxu1 %v1310_v27  ;;  %v1314_v35 = vld [vmem:[%s1849_s3 + $0x18] sm:$0xff]   ;;  %v1316_v38 = vld [vmem:[%s1849_s3 + $0x20] sm:$0xff]   ;;  %v1317_v40 = vld [vmem:[%s1849_s3 + $0x68] sm:$0xff]  }
  0x13   : > { %491 = vmatpush1.bf16.msra.mxu0 %v1270_v7  ;;  %516 = vmatprep.mubr.bf16.mxu0 %v265_v15  ;;  %v1298_v39 = vld [vmem:[%s1847_s1 + $0xd4] ss:$8 sps:$4 sm:$0xff]   ;;  %v1300_v41 = vld [vmem:[%s1847_s1 + $0xd0] ss:$8 sps:$4 sm:$0xff]   ;;  %v1303_v43 = vld [vmem:[%s1847_s1 + $0xe0] ss:$8 sps:$4 sm:$0xff]  }
  0x14   : > { %492 = vmatprep.subr.bf16.mxu0 %v1271_v8  ;;  %1191 = vmatprep.subr.bf16.mxu1 %v1311_v28  ;;  %v1304_v44 = vld [vmem:[%s1847_s1 + $0xf4] ss:$8 sps:$4 sm:$0xff]   ;;  %v1306_v45 = vld [vmem:[%s1847_s1 + $0xf0] ss:$8 sps:$4 sm:$0xff]   ;;  %v232_v46 = vld [vmem:[%s1472_s22] sm:$0xff] }
  0x15   : > { %v234_v47 = vld [vmem:[%s1472_s22 + $0x10] sm:$0xff]  ;;  %v237_v48 = vld [vmem:[%s1472_s22 + $0x28] sm:$0xff]  ;;  %v239_v49 = vld [vmem:[%s1472_s22 + $0x38] sm:$0xff] }
  0x16   : > { %1192 = vmatpush3.bf16.msra.mxu1 %v1312_v31  ;;  %v264_v50 = vpack.c.bf16 %v234_v47, %v232_v46  ;;  %v267_v51 = vpack.c.bf16 %v239_v49, %v237_v48  ;;  %v236_v52 = vld [vmem:[%s1472_s22 + $0x20] sm:$0xff]  ;;  %v238_v53 = vld [vmem:[%s1472_s22 + $0x30] sm:$0xff]  ;;  %v241_v54 = vld [vmem:[%s1472_s22 + $0x48] sm:$0xff] }
  0x17   : > { %493 = vmatpush1.bf16.msra.mxu0 %v1273_v9  ;;  %1193 = vmatprep.subr.bf16.mxu1 %v1313_v32  ;;  %v243_v55 = vld [vmem:[%s1472_s22 + $0x58] sm:$0xff]  ;;  %v266_v56 = vpack.c.bf16 %v238_v53, %v236_v52  ;;  %v240_v58 = vld [vmem:[%s1472_s22 + $0x40] sm:$0xff]  ;;  %v242_v59 = vld [vmem:[%s1472_s22 + $0x50] sm:$0xff]  ;;  %v314_v32 = vlaneseq }
  0x18   : > { %494 = vmatprep.subr.bf16.mxu0 %v1274_v10  ;;  %v269_v57 = vpack.c.bf16 %v243_v55, %v241_v54  ;;  %v245_v60 = vld [vmem:[%s1472_s22 + $0x68] sm:$0xff]  ;;  %v247_v61 = vld [vmem:[%s1472_s22 + $0x78] sm:$0xff]  ;;  %v268_v62 = vpack.c.bf16 %v242_v59, %v240_v58  ;;  %v244_v0 = vld [vmem:[%s1472_s22 + $0x60] sm:$0xff] }
  0x19   : > { %v271_v63 = vpack.c.bf16 %v247_v61, %v245_v60  ;;  %v246_v1 = vld [vmem:[%s1472_s22 + $0x70] sm:$0xff]  ;;  %v249_v2 = vld [vmem:[%s1472_s22 + $0x88] sm:$0xff]  ;;  %v251_v3 = vld [vmem:[%s1472_s22 + $0x98] sm:$0xff] }
  0x1a   : > { %1194 = vmatpush3.bf16.msra.mxu1 %v1314_v35  ;;  %v270_v4 = vpack.c.bf16 %v246_v1, %v244_v0  ;;  %v273_v5 = vpack.c.bf16 %v251_v3, %v249_v2  ;;  %v248_v6 = vld [vmem:[%s1472_s22 + $0x80] sm:$0xff]  ;;  %v250_v7 = vld [vmem:[%s1472_s22 + $0x90] sm:$0xff]  ;;  %v253_v8 = vld [vmem:[%s1472_s22 + $0xa8] sm:$0xff] }
  0x1b   : > { %495 = vmatpush1.bf16.msra.mxu0 %v1276_v11  ;;  %1195 = vmatprep.subr.bf16.mxu1 %v1315_v36  ;;  %v255_v9 = vld [vmem:[%s1472_s22 + $0xb8] sm:$0xff]  ;;  %v272_v10 = vpack.c.bf16 %v250_v7, %v248_v6  ;;  %v254_v13 = vld [vmem:[%s1472_s22 + $0xb0] sm:$0xff]  ;;  %v257_v14 = vld [vmem:[%s1472_s22 + $0xc8] sm:$0xff] }
  0x1c   : > { %496 = vmatprep.subr.bf16.mxu0 %v1277_v12  ;;  %v275_v11 = vpack.c.bf16 %v255_v9, %v253_v8  ;;  %v252_v12 = vld [vmem:[%s1472_s22 + $0xa0] sm:$0xff]  ;;  %v259_v15 = vld [vmem:[%s1472_s22 + $0xd8] sm:$0xff]  ;;  %v1318_v27 = vld [vmem:[%s1849_s3 + $0x28] sm:$0xff]  }
  0x1d   : > { %v260_v24 = vld [vmem:[%s1472_s22 + $0xe0] sm:$0xff]  ;;  %v1319_v28 = vld [vmem:[%s1849_s3 + $0x70] sm:$0xff]   ;;  %v1322_v31 = vld [vmem:[%s1849_s3 + $0x38] sm:$0xff]  }
  0x1e   : > { %1196 = vmatpush3.bf16.msra.mxu1 %v1316_v38  ;;  %v312_v35 = vld [vmem:[%s1848_s2] sm:$0x3] }
  0x1f   : > { %497 = vmatpush1.bf16.msra.mxu0 %v1279_v16  ;;  %1197 = vmatprep.subr.bf16.mxu1 %v1317_v40  ;;  %v274_v16 = vpack.c.bf16 %v254_v13, %v252_v12 }
  0x20   : > { %498 = vmatprep.subr.bf16.mxu0 %v1280_v17  ;;  %v277_v17 = vpack.c.bf16 %v259_v15, %v257_v14 }
  0x22   : > { %1198 = vmatpush3.bf16.msra.mxu1 %v1318_v27 }
  0x23   : > { %499 = vmatpush1.bf16.msra.mxu0 %v1282_v18  ;;  %v256_v18 = vld [vmem:[%s1472_s22 + $0xc0] sm:$0xff]  ;;  %1199 = vmatprep.subr.bf16.mxu1 %v1319_v28 }
  0x24   : > { %500 = vmatprep.subr.bf16.mxu0 %v1283_v19  ;;  %v258_v19 = vld [vmem:[%s1472_s22 + $0xd0] sm:$0xff] }
  0x25   : > { %v276_v22 = vpack.c.bf16 %v258_v19, %v256_v18 }
  0x27   : > { %501 = vmatpush1.bf16.msra.mxu0 %v1285_v20  ;;  %v261_v20 = vld [vmem:[%s1472_s22 + $0xe8] sm:$0xff] }
  0x28   : > { %502 = vmatprep.subr.bf16.mxu0 %v1286_v21  ;;  %v263_v21 = vld [vmem:[%s1472_s22 + $0xf8] sm:$0xff] }
  0x2b   : > { %503 = vmatpush1.bf16.msra.mxu0 %v1288_v23  ;;  %v279_v23 = vpack.c.bf16 %v263_v21, %v261_v20 }
  0x2c   : > { %504 = vmatprep.subr.bf16.mxu0 %v1289_v25  ;;  %v262_v25 = vld [vmem:[%s1472_s22 + $0xf0] sm:$0xff] }
  0x2d   : > { %v278_v26 = vpack.c.bf16 %v262_v25, %v260_v24 }
  0x2f   : > { %505 = vmatpush1.bf16.msra.mxu0 %v1291_v29  ;;  %v1320_v29 = vld [vmem:[%s1849_s3 + $0x30] sm:$0xff]  }
  0x30   : > { %506 = vmatprep.subr.bf16.mxu0 %v1292_v30  ;;  %1200 = vmatpush3.bf16.msra.mxu1 %v1320_v29  ;;  %v1321_v30 = vld [vmem:[%s1849_s3 + $0x78] sm:$0xff]  }
  0x31   : > { %1201 = vmatprep.subr.bf16.mxu1 %v1321_v30 }
  0x33   : > { %507 = vmatpush1.bf16.msra.mxu0 %v1294_v33  ;;  %v315_v33 = vshrl.u32 %v314_v32, 7 }
  0x34   : > { %508 = vmatprep.subr.bf16.mxu0 %v1295_v34  ;;  %1202 = vmatpush3.bf16.msra.mxu1 %v1322_v31 }
  0x35   : > { %v316_v34 = vsub.s32 0, %v315_v33  ;;  %v320_v36 = vsub.s32 1, %v315_v33 }
  0x37   : > { %509 = vmatpush1.bf16.msra.mxu0 %v1297_v37  ;;  %v1620_v37 = vrot.slane %v312_v35, %v316_v34  ;;  %v1622_v38 = vrot.slane %v312_v35, %v320_v36 }
  0x38   : > { %510 = vmatprep.subr.bf16.mxu0 %v1298_v39 }
  0x3b   : > { %511 = vmatpush1.bf16.msra.mxu0 %v1300_v41 }
  0x3c   : > { %512 = vmatprep.subr.bf16.mxu0 %v1301_v42 }
  0x3f   : > { %513 = vmatpush1.bf16.msra.mxu0 %v1303_v43 }
  0x40   : > { %514 = vmatprep.subr.bf16.mxu0 %v1304_v44 }
  0x43   : > { %515 = vmatpush1.bf16.msra.mxu0 %v1306_v45 }
  0x46   : > { %517 = vmatmul.mubr.bf16.vlgmr.msra.gmra.mrb[0].mxu0 %v264_v50 }
  0x47   : > { %526 = vmatprep.mubr.bf16.mxu0 %v267_v51 }
  0x4e   : > { %527 = vmatmul.mubr.bf16.gmra.mrb[4].mxu0 %v266_v56 }
  0x4f   : > { %536 = vmatprep.mubr.bf16.mxu0 %v269_v57 }
  0x56   : > { %537 = vmatmul.mubr.bf16.gmra.mrb[8].mxu0 %v268_v62 }
  0x57   : > { %546 = vmatprep.mubr.bf16.mxu0 %v271_v63 }
  0x5e   : > { %547 = vmatmul.mubr.bf16.gmra.mrb[12].mxu0 %v270_v4 }
  0x5f   : > { %556 = vmatprep.mubr.bf16.mxu0 %v273_v5 }
  0x66   : > { %557 = vmatmul.mubr.bf16.gmra.mrb[16].mxu0 %v272_v10 }
  0x67   : > { %566 = vmatprep.mubr.bf16.mxu0 %v275_v11 }
  0x6e   : > { %567 = vmatmul.mubr.bf16.gmra.mrb[20].mxu0 %v274_v16 }
  0x6f   : > { %576 = vmatprep.mubr.bf16.mxu0 %v277_v17 }
  0x76   : > { %577 = vmatmul.mubr.bf16.gmra.mrb[24].mxu0 %v276_v22 }
  0x77   : > { %586 = vmatprep.mubr.bf16.mxu0 %v279_v23 }
  0x7e   : > { %587 = vmatmul.mubr.bf16.gmra.mrb[28].mxu0 %v278_v26 }
 0x119   : > { %v518_v39 = vpop.f32.mrb[0].mxu0 }
 0x11a   : > { %v519_v40 = vadd.f32 %v518_v39, %v1620_v37  ;;  %v520_v41 = vpop.f32.mrb[1].mxu0 }
 0x11b   : > { %v521_v42 = vadd.f32 %v520_v41, %v1622_v38  ;;  %v522_v43 = vpop.f32.mrb[2].mxu0 }
 0x11c   : > { %v523_v44 = vadd.f32 %v522_v43, %v1620_v37  ;;  %v524_v45 = vpop.f32.mrb[3].mxu0  ;;  %v597_v47 = vmax.f32 %v519_v40, 0.0 }
 0x11d   : > { %v525_v46 = vadd.f32 %v524_v45, %v1622_v38  ;;  %v598_v49 = vmax.f32 %v521_v42, 0.0 }
 0x11e   : > { %v599_v48 = vmax.f32 %v523_v44, 0.0 }
 0x11f   : > { %v600_v50 = vmax.f32 %v525_v46, 0.0 }
 0x120   : > { %v629_v51 = vpack.c.bf16 %v599_v48, %v597_v47 }
 0x121   : > { %v528_v52 = vpop.f32.mrb[4].mxu0  ;;  %v630_v53 = vpack.c.bf16 %v600_v50, %v598_v49 }
 0x122   : > { %v529_v54 = vadd.f32 %v528_v52, %v1620_v37  ;;  %v530_v55 = vpop.f32.mrb[5].mxu0 }
 0x123   : > { %v531_v56 = vadd.f32 %v530_v55, %v1622_v38  ;;  %v532_v57 = vpop.f32.mrb[6].mxu0  ;;  %812 = vmatprep.mubr.bf16.mxu1 %v630_v53 }
 0x124   : > { %v533_v58 = vadd.f32 %v532_v57, %v1620_v37  ;;  %v534_v59 = vpop.f32.mrb[7].mxu0  ;;  %813 = vmatmul.mubr.bf16.vlgmr.msra.gmra.mrb[0].mxu1 %v629_v51  ;;  %v601_v61 = vmax.f32 %v529_v54, 0.0 }
 0x125   : > { %v535_v60 = vadd.f32 %v534_v59, %v1622_v38  ;;  %v602_v63 = vmax.f32 %v531_v56, 0.0 }
 0x126   : > { %v603_v62 = vmax.f32 %v533_v58, 0.0 }
 0x127   : > { %v604_v0 = vmax.f32 %v535_v60, 0.0 }
 0x128   : > { %v631_v1 = vpack.c.bf16 %v603_v62, %v601_v61 }
 0x129   : > { %v632_v2 = vpack.c.bf16 %v604_v0, %v602_v63  ;;  %v538_v3 = vpop.f32.mrb[8].mxu0 }
 0x12a   : > { %v539_v4 = vadd.f32 %v538_v3, %v1620_v37  ;;  %v540_v5 = vpop.f32.mrb[9].mxu0 }
 0x12b   : > { %v541_v6 = vadd.f32 %v540_v5, %v1622_v38  ;;  %v542_v7 = vpop.f32.mrb[10].mxu0  ;;  %820 = vmatprep.mubr.bf16.mxu1 %v632_v2 }
 0x12c   : > { %v543_v8 = vadd.f32 %v542_v7, %v1620_v37  ;;  %v544_v9 = vpop.f32.mrb[11].mxu0  ;;  %821 = vmatmul.mubr.bf16.gmra.mrb[4].mxu1 %v631_v1  ;;  %v605_v11 = vmax.f32 %v539_v4, 0.0 }
 0x12d   : > { %v545_v10 = vadd.f32 %v544_v9, %v1622_v38  ;;  %v606_v13 = vmax.f32 %v541_v6, 0.0 }
 0x12e   : > { %v607_v12 = vmax.f32 %v543_v8, 0.0 }
 0x12f   : > { %v608_v14 = vmax.f32 %v545_v10, 0.0 }
 0x130   : > { %v633_v15 = vpack.c.bf16 %v607_v12, %v605_v11 }
 0x131   : > { %v634_v16 = vpack.c.bf16 %v608_v14, %v606_v13  ;;  %v548_v17 = vpop.f32.mrb[12].mxu0 }
 0x132   : > { %v549_v18 = vadd.f32 %v548_v17, %v1620_v37  ;;  %v550_v19 = vpop.f32.mrb[13].mxu0 }
 0x133   : > { %v551_v20 = vadd.f32 %v550_v19, %v1622_v38  ;;  %v552_v21 = vpop.f32.mrb[14].mxu0  ;;  %828 = vmatprep.mubr.bf16.mxu1 %v634_v16 }
 0x134   : > { %v553_v22 = vadd.f32 %v552_v21, %v1620_v37  ;;  %v554_v23 = vpop.f32.mrb[15].mxu0  ;;  %829 = vmatmul.mubr.bf16.gmra.mrb[8].mxu1 %v633_v15  ;;  %v609_v25 = vmax.f32 %v549_v18, 0.0 }
 0x135   : > { %v555_v24 = vadd.f32 %v554_v23, %v1622_v38  ;;  %v610_v27 = vmax.f32 %v551_v20, 0.0 }
 0x136   : > { %v611_v26 = vmax.f32 %v553_v22, 0.0 }
 0x137   : > { %v612_v28 = vmax.f32 %v555_v24, 0.0 }
 0x138   : > { %v635_v29 = vpack.c.bf16 %v611_v26, %v609_v25  ;;  %v1659_v26 = vld [vmem:[%s1850_s4] ss:$0 sm:$0xff] }
 0x139   : > { %v636_v30 = vpack.c.bf16 %v612_v28, %v610_v27  ;;  %v558_v31 = vpop.f32.mrb[16].mxu0 }
 0x13a   : > { %v559_v32 = vadd.f32 %v558_v31, %v1620_v37  ;;  %v560_v33 = vpop.f32.mrb[17].mxu0 }
 0x13b   : > { %v561_v34 = vadd.f32 %v560_v33, %v1622_v38  ;;  %v562_v35 = vpop.f32.mrb[18].mxu0  ;;  %836 = vmatprep.mubr.bf16.mxu1 %v636_v30 }
 0x13c   : > { %v563_v36 = vadd.f32 %v562_v35, %v1620_v37  ;;  %v564_v39 = vpop.f32.mrb[19].mxu0  ;;  %837 = vmatmul.mubr.bf16.gmra.mrb[12].mxu1 %v635_v29  ;;  %v613_v41 = vmax.f32 %v559_v32, 0.0 }
 0x13d   : > { %v565_v40 = vadd.f32 %v564_v39, %v1622_v38  ;;  %v614_v43 = vmax.f32 %v561_v34, 0.0 }
 0x13e   : > { %v615_v42 = vmax.f32 %v563_v36, 0.0 }
 0x13f   : > { %v616_v44 = vmax.f32 %v565_v40, 0.0 }
 0x140   : > { %v637_v45 = vpack.c.bf16 %v615_v42, %v613_v41 }
 0x141   : > { %v638_v46 = vpack.c.bf16 %v616_v44, %v614_v43  ;;  %v568_v47 = vpop.f32.mrb[20].mxu0 }
 0x142   : > { %v569_v48 = vadd.f32 %v568_v47, %v1620_v37  ;;  %v570_v49 = vpop.f32.mrb[21].mxu0 }
 0x143   : > { %v571_v50 = vadd.f32 %v570_v49, %v1622_v38  ;;  %v572_v51 = vpop.f32.mrb[22].mxu0  ;;  %844 = vmatprep.mubr.bf16.mxu1 %v638_v46 }
 0x144   : > { %v573_v52 = vadd.f32 %v572_v51, %v1620_v37  ;;  %v574_v53 = vpop.f32.mrb[23].mxu0  ;;  %845 = vmatmul.mubr.bf16.gmra.mrb[16].mxu1 %v637_v45  ;;  %v617_v55 = vmax.f32 %v569_v48, 0.0 }
 0x145   : > { %v575_v54 = vadd.f32 %v574_v53, %v1622_v38  ;;  %v618_v57 = vmax.f32 %v571_v50, 0.0 }
 0x146   : > { %v619_v56 = vmax.f32 %v573_v52, 0.0 }
 0x147   : > { %v620_v58 = vmax.f32 %v575_v54, 0.0 }
 0x148   : > { %v639_v59 = vpack.c.bf16 %v619_v56, %v617_v55 }
 0x149   : > { %v640_v60 = vpack.c.bf16 %v620_v58, %v618_v57  ;;  %v578_v61 = vpop.f32.mrb[24].mxu0 }
 0x14a   : > { %v579_v62 = vadd.f32 %v578_v61, %v1620_v37  ;;  %v580_v63 = vpop.f32.mrb[25].mxu0 }
 0x14b   : > { %v581_v0 = vadd.f32 %v580_v63, %v1622_v38  ;;  %v582_v1 = vpop.f32.mrb[26].mxu0  ;;  %852 = vmatprep.mubr.bf16.mxu1 %v640_v60 }
 0x14c   : > { %v583_v2 = vadd.f32 %v582_v1, %v1620_v37  ;;  %v584_v3 = vpop.f32.mrb[27].mxu0  ;;  %853 = vmatmul.mubr.bf16.gmra.mrb[20].mxu1 %v639_v59  ;;  %v621_v5 = vmax.f32 %v579_v62, 0.0 }
 0x14d   : > { %v585_v4 = vadd.f32 %v584_v3, %v1622_v38  ;;  %v622_v7 = vmax.f32 %v581_v0, 0.0 }
 0x14e   : > { %v623_v6 = vmax.f32 %v583_v2, 0.0 }
 0x14f   : > { %v624_v8 = vmax.f32 %v585_v4, 0.0 }
 0x150   : > { %v641_v9 = vpack.c.bf16 %v623_v6, %v621_v5 }
 0x151   : > { %v642_v10 = vpack.c.bf16 %v624_v8, %v622_v7  ;;  %v588_v11 = vpop.f32.mrb[28].mxu0 }
 0x152   : > { %v589_v12 = vadd.f32 %v588_v11, %v1620_v37  ;;  %v590_v13 = vpop.f32.mrb[29].mxu0 }
 0x153   : > { %v591_v14 = vadd.f32 %v590_v13, %v1622_v38  ;;  %v592_v15 = vpop.f32.mrb[30].mxu0  ;;  %860 = vmatprep.mubr.bf16.mxu1 %v642_v10 }
 0x154   : > { %v593_v16 = vadd.f32 %v592_v15, %v1620_v37  ;;  %v594_v17 = vpop.f32.mrb[31].mxu0  ;;  %861 = vmatmul.mubr.bf16.gmra.mrb[24].mxu1 %v641_v9  ;;  %v625_v19 = vmax.f32 %v589_v12, 0.0 }
 0x155   : > { %v595_v18 = vadd.f32 %v594_v17, %v1622_v38  ;;  %v626_v21 = vmax.f32 %v591_v14, 0.0 }
 0x156   : > { %v627_v20 = vmax.f32 %v593_v16, 0.0 }
 0x157   : > { %v628_v22 = vmax.f32 %v595_v18, 0.0 }
 0x158   : > { %v643_v23 = vpack.c.bf16 %v627_v20, %v625_v19 }
 0x159   : > { %v644_v24 = vpack.c.bf16 %v628_v22, %v626_v21 }
 0x15b   : > { %868 = vmatprep.mubr.bf16.mxu1 %v644_v24 }
 0x15c   : > { %869 = vmatmul.mubr.bf16.gmra.mrb[28].mxu1 %v643_v23 }
 0x1f7   : > { %v1203_v25 = vpop.f32.mrb[0].mxu1 }
 0x1f8   : > { %v1204_v27 = vpop.f32.mrb[1].mxu1 }
 0x1f9   : > { %v1205_v37 = vadd.f32 %v1204_v27, %v1203_v25  ;;  %v1206_v28 = vpop.f32.mrb[2].mxu1 }
 0x1fa   : > { %v1207_v29 = vpop.f32.mrb[3].mxu1 }
 0x1fb   : > { %v1662_v38 = vadd.f32 %v1205_v37, %v1659_v26  ;;  %v1208_v30 = vadd.f32 %v1207_v29, %v1206_v28 }
 0x1fd   : > { %877 = vmax.xlane.f32.xlu0 %v1662_v38  ;;  %v1666_v31 = vadd.f32 %v1208_v30, %v1659_v26 }
 0x1ff   : > { %v1209_v32 = vpop.f32.mrb[4].mxu1 }
 0x200   : > { %v1210_v33 = vpop.f32.mrb[5].mxu1 }
 0x201   : > { %v1211_v34 = vadd.f32 %v1210_v33, %v1209_v32  ;;  %v1212_v35 = vpop.f32.mrb[6].mxu1  ;;  %879 = vmax.xlane.f32.xlu0 %v1666_v31 }
 0x202   : > { %v1213_v36 = vpop.f32.mrb[7].mxu1 }
 0x203   : > { %v1670_v39 = vadd.f32 %v1211_v34, %v1659_v26  ;;  %v1214_v40 = vadd.f32 %v1213_v36, %v1212_v35 }
 0x205   : > { %881 = vmax.xlane.f32.xlu1 %v1670_v39  ;;  %v1674_v41 = vadd.f32 %v1214_v40, %v1659_v26 }
 0x207   : > { %v1215_v42 = vpop.f32.mrb[8].mxu1 }
 0x208   : > { %v1216_v43 = vpop.f32.mrb[9].mxu1 }
 0x209   : > { %v1217_v44 = vadd.f32 %v1216_v43, %v1215_v42  ;;  %v1218_v45 = vpop.f32.mrb[10].mxu1  ;;  %883 = vmax.xlane.f32.xlu1 %v1674_v41 }
 0x20a   : > { %v1219_v46 = vpop.f32.mrb[11].mxu1 }
 0x20b   : > { %v1678_v47 = vadd.f32 %v1217_v44, %v1659_v26  ;;  %v1220_v48 = vadd.f32 %v1219_v46, %v1218_v45 }
 0x20d   : > { %v1681_v49 = vadd.f32 %v1220_v48, %v1659_v26  ;;  %885 = vmax.xlane.f32.xlu0 %v1678_v47 }
 0x20f   : > { %v1221_v50 = vpop.f32.mrb[12].mxu1  ;;  %887 = vmax.xlane.f32.xlu1 %v1681_v49 }
 0x210   : > { %v1222_v51 = vpop.f32.mrb[13].mxu1 }
 0x211   : > { %v1223_v52 = vadd.f32 %v1222_v51, %v1221_v50  ;;  %v1224_v53 = vpop.f32.mrb[14].mxu1 }
 0x212   : > { %v1225_v54 = vpop.f32.mrb[15].mxu1 }
 0x213   : > { %v1686_v55 = vadd.f32 %v1223_v52, %v1659_v26  ;;  %v1226_v56 = vadd.f32 %v1225_v54, %v1224_v53 }
 0x215   : > { %v1689_v57 = vadd.f32 %v1226_v56, %v1659_v26  ;;  %889 = vmax.xlane.f32.xlu0 %v1686_v55 }
 0x217   : > { %v1227_v58 = vpop.f32.mrb[16].mxu1  ;;  %891 = vmax.xlane.f32.xlu1 %v1689_v57 }
 0x218   : > { %v1228_v59 = vpop.f32.mrb[17].mxu1 }
 0x219   : > { %v1229_v60 = vadd.f32 %v1228_v59, %v1227_v58  ;;  %v1230_v61 = vpop.f32.mrb[18].mxu1 }
 0x21a   : > { %v1231_v62 = vpop.f32.mrb[19].mxu1 }
 0x21b   : > { %v1694_v63 = vadd.f32 %v1229_v60, %v1659_v26  ;;  %v1232_v0 = vadd.f32 %v1231_v62, %v1230_v61 }
 0x21d   : > { %v1697_v1 = vadd.f32 %v1232_v0, %v1659_v26  ;;  %893 = vmax.xlane.f32.xlu0 %v1694_v63 }
 0x21f   : > { %v1233_v2 = vpop.f32.mrb[20].mxu1  ;;  %895 = vmax.xlane.f32.xlu1 %v1697_v1 }
 0x220   : > { %v1234_v3 = vpop.f32.mrb[21].mxu1 }
 0x221   : > { %v1235_v4 = vadd.f32 %v1234_v3, %v1233_v2  ;;  %v1236_v5 = vpop.f32.mrb[22].mxu1 }
 0x222   : > { %v1237_v6 = vpop.f32.mrb[23].mxu1 }
 0x223   : > { %v1702_v7 = vadd.f32 %v1235_v4, %v1659_v26  ;;  %v1238_v8 = vadd.f32 %v1237_v6, %v1236_v5 }
 0x225   : > { %v1705_v9 = vadd.f32 %v1238_v8, %v1659_v26  ;;  %897 = vmax.xlane.f32.xlu0 %v1702_v7 }
 0x227   : > { %v1239_v10 = vpop.f32.mrb[24].mxu1  ;;  %899 = vmax.xlane.f32.xlu1 %v1705_v9 }
 0x228   : > { %v1240_v11 = vpop.f32.mrb[25].mxu1 }
 0x229   : > { %v1241_v12 = vadd.f32 %v1240_v11, %v1239_v10  ;;  %v1242_v13 = vpop.f32.mrb[26].mxu1 }
 0x22a   : > { %v1243_v14 = vpop.f32.mrb[27].mxu1 }
 0x22b   : > { %v1710_v15 = vadd.f32 %v1241_v12, %v1659_v26  ;;  %v1244_v16 = vadd.f32 %v1243_v14, %v1242_v13 }
 0x22d   : > { %v1713_v17 = vadd.f32 %v1244_v16, %v1659_v26  ;;  %901 = vmax.xlane.f32.xlu0 %v1710_v15 }
 0x22f   : > { %v1245_v18 = vpop.f32.mrb[28].mxu1  ;;  %903 = vmax.xlane.f32.xlu1 %v1713_v17 }
 0x230   : > { %v1246_v19 = vpop.f32.mrb[29].mxu1 }
 0x231   : > { %v1247_v20 = vadd.f32 %v1246_v19, %v1245_v18  ;;  %v1248_v21 = vpop.f32.mrb[30].mxu1 }
 0x232   : > { %v1249_v22 = vpop.f32.mrb[31].mxu1 }
 0x233   : > { %v1718_v23 = vadd.f32 %v1247_v20, %v1659_v26  ;;  %v1250_v24 = vadd.f32 %v1249_v22, %v1248_v21 }
 0x235   : > { %v1721_v25 = vadd.f32 %v1250_v24, %v1659_v26  ;;  %905 = vmax.xlane.f32.xlu0 %v1718_v23 }
 0x237   : > { %907 = vmax.xlane.f32.xlu1 %v1721_v25 }
 0x28a   : > { %v1725_v27 = vpop.xlane.xlu0 %877 }
 0x28b   : > { %v909_v37 = vsub.f32 %v1662_v38, %v1725_v27 }
 0x28d   : > { %v925_v28 = vmul.f32 1.442695, %v909_v37 }
 0x28e   : > { %v1729_v29 = vpop.xlane.xlu0 %879 }
 0x28f   : > { %1323 = vpow2.f32 %v925_v28  ;;  %v910_v30 = vsub.f32 %v1666_v31, %v1729_v29 }
 0x291   : > { %v927_v32 = vmul.f32 1.442695, %v910_v30 }
 0x292   : > { %v1733_v33 = vpop.xlane.xlu1 %881 }
 0x293   : > { %1325 = vpow2.f32 %v927_v32  ;;  %v911_v26 = vsub.f32 %v1670_v39, %v1733_v33 }
 0x295   : > { %v929_v34 = vmul.f32 1.442695, %v911_v26 }
 0x296   : > { %v1737_v35 = vpop.xlane.xlu1 %883 }
 0x297   : > { %1327 = vpow2.f32 %v929_v34  ;;  %v912_v36 = vsub.f32 %v1674_v41, %v1737_v35 }
 0x299   : > { %v1324_v40 = vpop.eup %1323  ;;  %v931_v42 = vmul.f32 1.442695, %v912_v36 }
 0x29a   : > { %957 = vadd.xlane.f32.xlu0 %v1324_v40  ;;  %v1741_v43 = vpop.xlane.xlu0 %885 }
 0x29b   : > { %1329 = vpow2.f32 %v931_v42  ;;  %v913_v44 = vsub.f32 %v1678_v47, %v1741_v43 }
 0x29c   : > { %v1745_v45 = vpop.xlane.xlu1 %887 }
 0x29d   : > { %v1326_v46 = vpop.eup %1325  ;;  %v933_v48 = vmul.f32 1.442695, %v913_v44  ;;  %v914_v50 = vsub.f32 %v1681_v49, %v1745_v45 }
 0x29e   : > { %959 = vadd.xlane.f32.xlu1 %v1326_v46 }
 0x29f   : > { %1331 = vpow2.f32 %v933_v48  ;;  %v935_v51 = vmul.f32 1.442695, %v914_v50 }
 0x2a1   : > { %v1328_v52 = vpop.eup %1327  ;;  %1333 = vpow2.f32 %v935_v51 }
 0x2a2   : > { %961 = vadd.xlane.f32.xlu0 %v1328_v52  ;;  %v1749_v53 = vpop.xlane.xlu0 %889 }
 0x2a3   : > { %v915_v54 = vsub.f32 %v1686_v55, %v1749_v53 }
 0x2a4   : > { %v1753_v56 = vpop.xlane.xlu1 %891 }
 0x2a5   : > { %v1330_v58 = vpop.eup %1329  ;;  %v937_v59 = vmul.f32 1.442695, %v915_v54  ;;  %v916_v60 = vsub.f32 %v1689_v57, %v1753_v56 }
 0x2a6   : > { %963 = vadd.xlane.f32.xlu1 %v1330_v58 }
 0x2a7   : > { %1335 = vpow2.f32 %v937_v59  ;;  %v939_v61 = vmul.f32 1.442695, %v916_v60 }
 0x2a9   : > { %v1332_v62 = vpop.eup %1331  ;;  %1337 = vpow2.f32 %v939_v61 }
 0x2aa   : > { %965 = vadd.xlane.f32.xlu0 %v1332_v62  ;;  %v1757_v0 = vpop.xlane.xlu0 %893 }
 0x2ab   : > { %v1334_v2 = vpop.eup %1333  ;;  %v917_v3 = vsub.f32 %v1694_v63, %v1757_v0 }
 0x2ac   : > { %v1761_v4 = vpop.xlane.xlu1 %895  ;;  %967 = vadd.xlane.f32.xlu1 %v1334_v2 }
 0x2ad   : > { %v941_v5 = vmul.f32 1.442695, %v917_v3  ;;  %v918_v6 = vsub.f32 %v1697_v1, %v1761_v4 }
 0x2af   : > { %1339 = vpow2.f32 %v941_v5  ;;  %v943_v8 = vmul.f32 1.442695, %v918_v6 }
 0x2b1   : > { %v1336_v10 = vpop.eup %1335  ;;  %1341 = vpow2.f32 %v943_v8 }
 0x2b2   : > { %969 = vadd.xlane.f32.xlu0 %v1336_v10  ;;  %v1765_v11 = vpop.xlane.xlu0 %897 }
 0x2b3   : > { %v1338_v12 = vpop.eup %1337  ;;  %v919_v13 = vsub.f32 %v1702_v7, %v1765_v11 }
 0x2b4   : > { %v1769_v14 = vpop.xlane.xlu1 %899  ;;  %971 = vadd.xlane.f32.xlu1 %v1338_v12 }
 0x2b5   : > { %v945_v16 = vmul.f32 1.442695, %v919_v13  ;;  %v920_v18 = vsub.f32 %v1705_v9, %v1769_v14 }
 0x2b7   : > { %1343 = vpow2.f32 %v945_v16  ;;  %v947_v19 = vmul.f32 1.442695, %v920_v18 }
 0x2b9   : > { %v1340_v20 = vpop.eup %1339  ;;  %1345 = vpow2.f32 %v947_v19 }
 0x2ba   : > { %973 = vadd.xlane.f32.xlu0 %v1340_v20  ;;  %v1773_v21 = vpop.xlane.xlu0 %901 }
 0x2bb   : > { %v1342_v22 = vpop.eup %1341  ;;  %v921_v24 = vsub.f32 %v1710_v15, %v1773_v21 }
 0x2bc   : > { %v1777_v37 = vpop.xlane.xlu1 %903  ;;  %975 = vadd.xlane.f32.xlu1 %v1342_v22 }
 0x2bd   : > { %v949_v28 = vmul.f32 1.442695, %v921_v24  ;;  %v922_v30 = vsub.f32 %v1713_v17, %v1777_v37 }
 0x2bf   : > { %1347 = vpow2.f32 %v949_v28  ;;  %v951_v32 = vmul.f32 1.442695, %v922_v30 }
 0x2c1   : > { %v1344_v26 = vpop.eup %1343  ;;  %1349 = vpow2.f32 %v951_v32 }
 0x2c2   : > { %977 = vadd.xlane.f32.xlu0 %v1344_v26  ;;  %v1781_v34 = vpop.xlane.xlu0 %905 }
 0x2c3   : > { %v1346_v36 = vpop.eup %1345  ;;  %v923_v40 = vsub.f32 %v1718_v23, %v1781_v34 }
 0x2c4   : > { %v1785_v42 = vpop.xlane.xlu1 %907  ;;  %979 = vadd.xlane.f32.xlu1 %v1346_v36 }
 0x2c5   : > { %v953_v44 = vmul.f32 1.442695, %v923_v40  ;;  %v924_v46 = vsub.f32 %v1721_v25, %v1785_v42 }
 0x2c7   : > { %1351 = vpow2.f32 %v953_v44  ;;  %v955_v48 = vmul.f32 1.442695, %v924_v46 }
 0x2c9   : > { %v1348_v50 = vpop.eup %1347  ;;  %1353 = vpow2.f32 %v955_v48 }
 0x2ca   : > { %981 = vadd.xlane.f32.xlu0 %v1348_v50 }
 0x2cb   : > { %v1350_v51 = vpop.eup %1349 }
 0x2cc   : > { %983 = vadd.xlane.f32.xlu1 %v1350_v51 }
 0x2d1   : > { %v1352_v52 = vpop.eup %1351 }
 0x2d2   : > { %985 = vadd.xlane.f32.xlu0 %v1352_v52 }
 0x2d3   : > { %v1354_v54 = vpop.eup %1353 }
 0x2d4   : > { %987 = vadd.xlane.f32.xlu1 %v1354_v54 }
 0x327   : > { %v958_v58 = vpop.xlane.xlu0 %957 }
 0x328   : > { %1355 = vlog2.f32 %v958_v58 }
 0x32b   : > { %v960_v59 = vpop.xlane.xlu1 %959 }
 0x32c   : > { %1357 = vlog2.f32 %v960_v59 }
 0x32f   : > { %v962_v60 = vpop.xlane.xlu0 %961 }
 0x330   : > { %1359 = vlog2.f32 %v962_v60 }
 0x332   : > { %v1356_v61 = vpop.eup %1355 }
 0x333   : > { %v990_v62 = vmul.f32 0.6931472, %v1356_v61  ;;  %v964_v2 = vpop.xlane.xlu1 %963 }
 0x334   : > { %1361 = vlog2.f32 %v964_v2 }
 0x335   : > { %v1021_v3 = vadd.f32 %v990_v62, %v1725_v27 }
 0x336   : > { %v1358_v5 = vpop.eup %1357 }
 0x337   : > { %v1037_v6 = vsub.f32 %v1662_v38, %v1021_v3  ;;  %v992_v8 = vmul.f32 0.6931472, %v1358_v5  ;;  %v966_v10 = vpop.xlane.xlu0 %965 }
 0x338   : > { %1363 = vlog2.f32 %v966_v10 }
 0x339   : > { %1053 = vst [vmem:[%s1794_s13] sm:$0xff] %v1037_v6  ;;  %v1022_v12 = vadd.f32 %v992_v8, %v1729_v29  ;;  %v968_v13 = vpop.xlane.xlu1 %967 }
 0x33a   : > { %v1360_v16 = vpop.eup %1359  ;;  %1365 = vlog2.f32 %v968_v13 }
 0x33b   : > { %v1038_v27 = vsub.f32 %v1666_v31, %v1022_v12  ;;  %v994_v18 = vmul.f32 0.6931472, %v1360_v16 }
 0x33d   : > { %1054 = vst [vmem:[%s1794_s13 + $0x8] sm:$0xff] %v1038_v27  ;;  %v1023_v19 = vadd.f32 %v994_v18, %v1733_v33 }
 0x33e   : > { %v1362_v20 = vpop.eup %1361 }
 0x33f   : > { %v1039_v38 = vsub.f32 %v1670_v39, %v1023_v19  ;;  %v996_v22 = vmul.f32 0.6931472, %v1362_v20  ;;  %v970_v24 = vpop.xlane.xlu0 %969 }
 0x340   : > { %1367 = vlog2.f32 %v970_v24 }
 0x341   : > { %1055 = vst [vmem:[%s1794_s13 + $0x10] sm:$0xff] %v1039_v38  ;;  %v1024_v29 = vadd.f32 %v996_v22, %v1737_v35  ;;  %v972_v28 = vpop.xlane.xlu1 %971 }
 0x342   : > { %v1364_v30 = vpop.eup %1363  ;;  %1369 = vlog2.f32 %v972_v28 }
 0x343   : > { %v1040_v31 = vsub.f32 %v1674_v41, %v1024_v29  ;;  %v998_v32 = vmul.f32 0.6931472, %v1364_v30 }
 0x344   : > { %v1366_v26 = vpop.eup %1365 }
 0x345   : > { %1056 = vst [vmem:[%s1794_s13 + $0x18] sm:$0xff] %v1040_v31  ;;  %v1025_v33 = vadd.f32 %v998_v32, %v1741_v43  ;;  %v1000_v36 = vmul.f32 0.6931472, %v1366_v26 }
 0x347   : > { %v1041_v39 = vsub.f32 %v1678_v47, %v1025_v33  ;;  %v1026_v40 = vadd.f32 %v1000_v36, %v1745_v45  ;;  %v974_v44 = vpop.xlane.xlu0 %973 }
 0x348   : > { %1371 = vlog2.f32 %v974_v44 }
 0x349   : > { %1057 = vst [vmem:[%s1794_s13 + $0x20] sm:$0xff] %v1041_v39  ;;  %v1042_v35 = vsub.f32 %v1681_v49, %v1026_v40  ;;  %v976_v46 = vpop.xlane.xlu1 %975 }
 0x34a   : > { %v1368_v48 = vpop.eup %1367  ;;  %1373 = vlog2.f32 %v976_v46 }
 0x34b   : > { %1058 = vst [vmem:[%s1794_s13 + $0x28] sm:$0xff] %v1042_v35  ;;  %v1002_v41 = vmul.f32 0.6931472, %v1368_v48 }
 0x34c   : > { %v1370_v50 = vpop.eup %1369 }
 0x34d   : > { %v1027_v43 = vadd.f32 %v1002_v41, %v1749_v53  ;;  %v1004_v51 = vmul.f32 0.6931472, %v1370_v50 }
 0x34f   : > { %v1043_v47 = vsub.f32 %v1686_v55, %v1027_v43  ;;  %v1028_v45 = vadd.f32 %v1004_v51, %v1753_v56  ;;  %v978_v52 = vpop.xlane.xlu0 %977 }
 0x350   : > { %1375 = vlog2.f32 %v978_v52 }
 0x351   : > { %1059 = vst [vmem:[%s1794_s13 + $0x30] sm:$0xff] %v1043_v47  ;;  %v1044_v49 = vsub.f32 %v1689_v57, %v1028_v45  ;;  %v980_v54 = vpop.xlane.xlu1 %979 }
 0x352   : > { %v1372_v58 = vpop.eup %1371  ;;  %1377 = vlog2.f32 %v980_v54 }
 0x353   : > { %1060 = vst [vmem:[%s1794_s13 + $0x38] sm:$0xff] %v1044_v49  ;;  %v1006_v59 = vmul.f32 0.6931472, %v1372_v58 }
 0x354   : > { %v1374_v60 = vpop.eup %1373 }
 0x355   : > { %v1029_v53 = vadd.f32 %v1006_v59, %v1757_v0  ;;  %v1008_v61 = vmul.f32 0.6931472, %v1374_v60 }
 0x357   : > { %v1045_v55 = vsub.f32 %v1694_v63, %v1029_v53  ;;  %v1030_v56 = vadd.f32 %v1008_v61, %v1761_v4  ;;  %v982_v62 = vpop.xlane.xlu0 %981 }
 0x358   : > { %1379 = vlog2.f32 %v982_v62 }
 0x359   : > { %1061 = vst [vmem:[%s1794_s13 + $0x40] sm:$0xff] %v1045_v55  ;;  %v1046_v57 = vsub.f32 %v1697_v1, %v1030_v56  ;;  %v984_v2 = vpop.xlane.xlu1 %983 }
 0x35a   : > { %v1376_v3 = vpop.eup %1375  ;;  %1381 = vlog2.f32 %v984_v2 }
 0x35b   : > { %1062 = vst [vmem:[%s1794_s13 + $0x48] sm:$0xff] %v1046_v57  ;;  %v1010_v5 = vmul.f32 0.6931472, %v1376_v3 }
 0x35c   : > { %v1378_v6 = vpop.eup %1377 }
 0x35d   : > { %v1031_v0 = vadd.f32 %v1010_v5, %v1765_v11  ;;  %v1012_v8 = vmul.f32 0.6931472, %v1378_v6 }
 0x35f   : > { %v1047_v63 = vsub.f32 %v1702_v7, %v1031_v0  ;;  %v1032_v4 = vadd.f32 %v1012_v8, %v1769_v14  ;;  %v986_v10 = vpop.xlane.xlu0 %985 }
 0x360   : > { %1383 = vlog2.f32 %v986_v10 }
 0x361   : > { %1063 = vst [vmem:[%s1794_s13 + $0x50] sm:$0xff] %v1047_v63  ;;  %v1048_v1 = vsub.f32 %v1705_v9, %v1032_v4  ;;  %v988_v12 = vpop.xlane.xlu1 %987 }
 0x362   : > { %v1380_v13 = vpop.eup %1379  ;;  %1385 = vlog2.f32 %v988_v12 }
 0x363   : > { %1064 = vst [vmem:[%s1794_s13 + $0x58] sm:$0xff] %v1048_v1  ;;  %v1014_v16 = vmul.f32 0.6931472, %v1380_v13 }
 0x364   : > { %v1382_v27 = vpop.eup %1381 }
 0x365   : > { %v1033_v11 = vadd.f32 %v1014_v16, %v1773_v21  ;;  %v1016_v7 = vmul.f32 0.6931472, %v1382_v27 }
 0x367   : > { %v1049_v18 = vsub.f32 %v1710_v15, %v1033_v11  ;;  %v1034_v14 = vadd.f32 %v1016_v7, %v1777_v37 }
 0x369   : > { %1065 = vst [vmem:[%s1794_s13 + $0x60] sm:$0xff] %v1049_v18  ;;  %v1050_v19 = vsub.f32 %v1713_v17, %v1034_v14 }
 0x36a   : > { %v1384_v20 = vpop.eup %1383 }
 0x36b   : > { %1066 = vst [vmem:[%s1794_s13 + $0x68] sm:$0xff] %v1050_v19  ;;  %v1018_v9 = vmul.f32 0.6931472, %v1384_v20 }
 0x36c   : > { %v1386_v38 = vpop.eup %1385 }
 0x36d   : > { %v1035_v22 = vadd.f32 %v1018_v9, %v1781_v34  ;;  %v1020_v24 = vmul.f32 0.6931472, %v1386_v38 }
 0x36f   : > { %v1051_v29 = vsub.f32 %v1718_v23, %v1035_v22  ;;  %v1036_v21 = vadd.f32 %v1020_v24, %v1785_v42 }
 0x371   : > { %1067 = vst [vmem:[%s1794_s13 + $0x70] sm:$0xff] %v1051_v29  ;;  %v1052_v28 = vsub.f32 %v1721_v25, %v1036_v21 }
 0x373   : > { %1068 = vst [vmem:[%s1794_s13 + $0x78] sm:$0xff] %v1052_v28 }
 0x374 PF: > { %s15_s18 = sadd.s32 1, %s1393_s18  }
 0x375   : > { %p12_p4 = scmp.ge.s32.totalorder %s15_s18, 4  }
 0x377   :  { %14 = sbr.rel (!%p12_p4) target bundleno = 1 (0x1), region = 70 }

// kernel: sgc_forward.2
= control target key start
LH: loop header
LB: loop body
LE: loop exit
PB: predicated region body
PF: predicated region fallthrough
CT: control target
= control target key end

     0   :  { %s2518_s1 = inlined_call_operand.vmem [shape: bf16[256,256], index: 1, kind: input, shape index: {}]   ;;  %s2519_s0 = inlined_call_operand.vmem [shape: bf16[256,256], index: 0, kind: input, shape index: {}]   ;;  %s2520_s2 = inlined_call_operand.vmem [shape: f32[256,256], index: 2, kind: output, shape index: {}]  }
   0x1   :  { %v1788_v0 = vld [vmem:[%s2518_s1 + $0x4] ss:$8 sps:$4 sm:$0xff]   ;;  %v1790_v1 = vld [vmem:[%s2518_s1] ss:$8 sps:$4 sm:$0xff]   ;;  %v1791_v2 = vld [vmem:[%s2518_s1 + $0x14] ss:$8 sps:$4 sm:$0xff]  }
   0x2   :  { %398 = vmatprep.subr.bf16.mxu0 %v1788_v0  ;;  %1756 = vmatprep.subr.bf16.mxu1 %v1788_v0  ;;  %v1793_v3 = vld [vmem:[%s2518_s1 + $0x10] ss:$8 sps:$4 sm:$0xff]   ;;  %v1794_v4 = vld [vmem:[%s2518_s1 + $0x24] ss:$8 sps:$4 sm:$0xff]   ;;  %v1796_v5 = vld [vmem:[%s2518_s1 + $0x20] ss:$8 sps:$4 sm:$0xff]  }
   0x3   :  { %399 = vmatpush1.bf16.msra.mxu0 %v1790_v1  ;;  %1772 = vmatpush1.bf16.msra.mxu1 %v1790_v1  ;;  %v1797_v6 = vld [vmem:[%s2518_s1 + $0x34] ss:$8 sps:$4 sm:$0xff]   ;;  %v1799_v7 = vld [vmem:[%s2518_s1 + $0x30] ss:$8 sps:$4 sm:$0xff]   ;;  %v1800_v8 = vld [vmem:[%s2518_s1 + $0x44] ss:$8 sps:$4 sm:$0xff]  }
   0x4   :  { %400 = vmatprep.subr.bf16.mxu0 %v1791_v2  ;;  %1757 = vmatprep.subr.bf16.mxu1 %v1791_v2  ;;  %v1802_v9 = vld [vmem:[%s2518_s1 + $0x40] ss:$8 sps:$4 sm:$0xff]   ;;  %v1803_v10 = vld [vmem:[%s2518_s1 + $0x54] ss:$8 sps:$4 sm:$0xff]   ;;  %v1805_v11 = vld [vmem:[%s2518_s1 + $0x50] ss:$8 sps:$4 sm:$0xff]  }
   0x5   :  { %v1806_v12 = vld [vmem:[%s2518_s1 + $0x64] ss:$8 sps:$4 sm:$0xff]   ;;  %v1808_v14 = vld [vmem:[%s2518_s1 + $0x60] ss:$8 sps:$4 sm:$0xff]   ;;  %v1809_v15 = vld [vmem:[%s2518_s1 + $0x74] ss:$8 sps:$4 sm:$0xff]  }
   0x6   :  { %v1941_v13 = vld [vmem:[%s2519_s0 + $0x4] ss:$8 sps:$4 sm:$0xff]   ;;  %v1811_v16 = vld [vmem:[%s2518_s1 + $0x70] ss:$8 sps:$4 sm:$0xff]   ;;  %v1814_v19 = vld [vmem:[%s2518_s1 + $0x80] ss:$8 sps:$4 sm:$0xff]  }
   0x7   :  { %401 = vmatpush1.bf16.msra.mxu0 %v1793_v3  ;;  %1773 = vmatpush1.bf16.msra.mxu1 %v1793_v3  ;;  %v1956_v17 = vld [vmem:[%s2519_s0 + $0x84] ss:$8 sps:$4 sm:$0xff]   ;;  %v1815_v20 = vld [vmem:[%s2518_s1 + $0x94] ss:$8 sps:$4 sm:$0xff]   ;;  %v1817_v21 = vld [vmem:[%s2518_s1 + $0x90] ss:$8 sps:$4 sm:$0xff]  }
   0x8   :  { %402 = vmatprep.subr.bf16.mxu0 %v1794_v4  ;;  %1758 = vmatprep.subr.bf16.mxu1 %v1794_v4  ;;  %v1812_v18 = vld [vmem:[%s2518_s1 + $0x84] ss:$8 sps:$4 sm:$0xff]   ;;  %v1820_v23 = vld [vmem:[%s2518_s1 + $0xa0] ss:$8 sps:$4 sm:$0xff]   ;;  %v1821_v24 = vld [vmem:[%s2518_s1 + $0xb4] ss:$8 sps:$4 sm:$0xff]  }
   0x9   :  { %430 = vmatprep.mubr.bf16.mxu0 %v1941_v13  ;;  %510 = vmatprep.mubr.bf16.mxu1 %v1956_v17  ;;  %v1818_v22 = vld [vmem:[%s2518_s1 + $0xa4] ss:$8 sps:$4 sm:$0xff]   ;;  %v1823_v25 = vld [vmem:[%s2518_s1 + $0xb0] ss:$8 sps:$4 sm:$0xff]   ;;  %v1826_v27 = vld [vmem:[%s2518_s1 + $0xc0] ss:$8 sps:$4 sm:$0xff]  }
   0xa   :  { %v1824_v26 = vld [vmem:[%s2518_s1 + $0xc4] ss:$8 sps:$4 sm:$0xff]   ;;  %v1827_v28 = vld [vmem:[%s2518_s1 + $0xd4] ss:$8 sps:$4 sm:$0xff]   ;;  %v1829_v29 = vld [vmem:[%s2518_s1 + $0xd0] ss:$8 sps:$4 sm:$0xff]  }
   0xb   :  { %403 = vmatpush1.bf16.msra.mxu0 %v1796_v5  ;;  %1774 = vmatpush1.bf16.msra.mxu1 %v1796_v5  ;;  %v1830_v30 = vld [vmem:[%s2518_s1 + $0xe4] ss:$8 sps:$4 sm:$0xff]   ;;  %v1832_v31 = vld [vmem:[%s2518_s1 + $0xe0] ss:$8 sps:$4 sm:$0xff]   ;;  %v1833_v32 = vld [vmem:[%s2518_s1 + $0xf4] ss:$8 sps:$4 sm:$0xff]  }
   0xc   :  { %404 = vmatprep.subr.bf16.mxu0 %v1797_v6  ;;  %1759 = vmatprep.subr.bf16.mxu1 %v1797_v6  ;;  %v1835_v33 = vld [vmem:[%s2518_s1 + $0xf0] ss:$8 sps:$4 sm:$0xff]   ;;  %v2010_v34 = vld [vmem:[%s2519_s0] ss:$8 sps:$4 sm:$0xff]   ;;  %v2020_v36 = vld [vmem:[%s2519_s0 + $0x14] ss:$8 sps:$4 sm:$0xff]  }
   0xd   :  { %v2015_v35 = vld [vmem:[%s2519_s0 + $0x80] ss:$8 sps:$4 sm:$0xff]   ;;  %v2025_v37 = vld [vmem:[%s2519_s0 + $0x94] ss:$8 sps:$4 sm:$0xff]   ;;  %v2034_v38 = vld [vmem:[%s2519_s0 + $0x10] ss:$8 sps:$4 sm:$0xff]  }
   0xe   :  { %v2039_v39 = vld [vmem:[%s2519_s0 + $0x90] ss:$8 sps:$4 sm:$0xff]   ;;  %v2044_v40 = vld [vmem:[%s2519_s0 + $0x24] ss:$8 sps:$4 sm:$0xff]   ;;  %v2058_v42 = vld [vmem:[%s2519_s0 + $0x20] ss:$8 sps:$4 sm:$0xff]  }
   0xf   :  { %405 = vmatpush1.bf16.msra.mxu0 %v1799_v7  ;;  %1775 = vmatpush1.bf16.msra.mxu1 %v1799_v7  ;;  %v2049_v41 = vld [vmem:[%s2519_s0 + $0xa4] ss:$8 sps:$4 sm:$0xff]   ;;  %v2063_v43 = vld [vmem:[%s2519_s0 + $0xa0] ss:$8 sps:$4 sm:$0xff]   ;;  %v2068_v44 = vld [vmem:[%s2519_s0 + $0x34] ss:$8 sps:$4 sm:$0xff]  }
  0x10   :  { %406 = vmatprep.subr.bf16.mxu0 %v1800_v8  ;;  %1760 = vmatprep.subr.bf16.mxu1 %v1800_v8  ;;  %2543 = vst [vmem:[#allocation4_spill] sm:$0xff] %v2063_v43  ;;  %v2073_v45 = vld [vmem:[%s2519_s0 + $0xb4] ss:$8 sps:$4 sm:$0xff]   ;;  %v2082_v46 = vld [vmem:[%s2519_s0 + $0x30] ss:$8 sps:$4 sm:$0xff]  }
  0x11   :  { %2544 = vst [vmem:[#allocation5_spill] sm:$0xff] %v2073_v45  ;;  %v2087_v47 = vld [vmem:[%s2519_s0 + $0xb0] ss:$8 sps:$4 sm:$0xff]   ;;  %v2092_v48 = vld [vmem:[%s2519_s0 + $0x44] ss:$8 sps:$4 sm:$0xff]  }
  0x12   :  { %2545 = vst [vmem:[#allocation6_spill] sm:$0xff] %v2087_v47  ;;  %v2097_v49 = vld [vmem:[%s2519_s0 + $0xc4] ss:$8 sps:$4 sm:$0xff]   ;;  %v2106_v50 = vld [vmem:[%s2519_s0 + $0x40] ss:$8 sps:$4 sm:$0xff]  }
  0x13   :  { %407 = vmatpush1.bf16.msra.mxu0 %v1802_v9  ;;  %1776 = vmatpush1.bf16.msra.mxu1 %v1802_v9  ;;  %2546 = vst [vmem:[#allocation7_spill] sm:$0xff] %v2097_v49  ;;  %v2111_v51 = vld [vmem:[%s2519_s0 + $0xc0] ss:$8 sps:$4 sm:$0xff]   ;;  %v2116_v52 = vld [vmem:[%s2519_s0 + $0x54] ss:$8 sps:$4 sm:$0xff]  }
  0x14   :  { %408 = vmatprep.subr.bf16.mxu0 %v1803_v10  ;;  %1761 = vmatprep.subr.bf16.mxu1 %v1803_v10  ;;  %2547 = vst [vmem:[#allocation8_spill] sm:$0xff] %v2111_v51  ;;  %v2121_v53 = vld [vmem:[%s2519_s0 + $0xd4] ss:$8 sps:$4 sm:$0xff]   ;;  %v2130_v54 = vld [vmem:[%s2519_s0 + $0x50] ss:$8 sps:$4 sm:$0xff]  }
  0x15   :  { %2548 = vst [vmem:[#allocation9_spill] sm:$0xff] %v2121_v53  ;;  %v2135_v55 = vld [vmem:[%s2519_s0 + $0xd0] ss:$8 sps:$4 sm:$0xff]   ;;  %v2140_v56 = vld [vmem:[%s2519_s0 + $0x64] ss:$8 sps:$4 sm:$0xff]  }
  0x16   :  { %2549 = vst [vmem:[#allocation10_spill] sm:$0xff] %v2135_v55  ;;  %v2145_v57 = vld [vmem:[%s2519_s0 + $0xe4] ss:$8 sps:$4 sm:$0xff]   ;;  %v2154_v58 = vld [vmem:[%s2519_s0 + $0x60] ss:$8 sps:$4 sm:$0xff]  }
  0x17   :  { %409 = vmatpush1.bf16.msra.mxu0 %v1805_v11  ;;  %1777 = vmatpush1.bf16.msra.mxu1 %v1805_v11  ;;  %2550 = vst [vmem:[#allocation11_spill] sm:$0xff] %v2145_v57  ;;  %v2159_v59 = vld [vmem:[%s2519_s0 + $0xe0] ss:$8 sps:$4 sm:$0xff]   ;;  %v2164_v60 = vld [vmem:[%s2519_s0 + $0x74] ss:$8 sps:$4 sm:$0xff]  }
  0x18   :  { %410 = vmatprep.subr.bf16.mxu0 %v1806_v12  ;;  %1762 = vmatprep.subr.bf16.mxu1 %v1806_v12  ;;  %2551 = vst [vmem:[#allocation12_spill] sm:$0xff] %v2159_v59  ;;  %v2169_v61 = vld [vmem:[%s2519_s0 + $0xf4] ss:$8 sps:$4 sm:$0xff]   ;;  %v2178_v62 = vld [vmem:[%s2519_s0 + $0x70] ss:$8 sps:$4 sm:$0xff]  }
  0x19   :  { %2552 = vst [vmem:[#allocation13_spill] sm:$0xff] %v2169_v61  ;;  %v2183_v63 = vld [vmem:[%s2519_s0 + $0xf0] ss:$8 sps:$4 sm:$0xff]  }
  0x1a   :  { %2553 = vst [vmem:[#allocation14_spill] sm:$0xff] %v2183_v63 }
  0x1b   :  { %411 = vmatpush1.bf16.msra.mxu0 %v1808_v14  ;;  %1778 = vmatpush1.bf16.msra.mxu1 %v1808_v14 }
  0x1c   :  { %412 = vmatprep.subr.bf16.mxu0 %v1809_v15  ;;  %1763 = vmatprep.subr.bf16.mxu1 %v1809_v15 }
  0x1f   :  { %413 = vmatpush1.bf16.msra.mxu0 %v1811_v16  ;;  %1779 = vmatpush1.bf16.msra.mxu1 %v1811_v16 }
  0x20   :  { %414 = vmatprep.subr.bf16.mxu0 %v1812_v18  ;;  %1764 = vmatprep.subr.bf16.mxu1 %v1812_v18 }
  0x23   :  { %415 = vmatpush1.bf16.msra.mxu0 %v1814_v19  ;;  %1780 = vmatpush1.bf16.msra.mxu1 %v1814_v19 }
  0x24   :  { %416 = vmatprep.subr.bf16.mxu0 %v1815_v20  ;;  %1765 = vmatprep.subr.bf16.mxu1 %v1815_v20 }
  0x27   :  { %417 = vmatpush1.bf16.msra.mxu0 %v1817_v21  ;;  %1781 = vmatpush1.bf16.msra.mxu1 %v1817_v21 }
  0x28   :  { %418 = vmatprep.subr.bf16.mxu0 %v1818_v22  ;;  %1766 = vmatprep.subr.bf16.mxu1 %v1818_v22 }
  0x2b   :  { %419 = vmatpush1.bf16.msra.mxu0 %v1820_v23  ;;  %1782 = vmatpush1.bf16.msra.mxu1 %v1820_v23 }
  0x2c   :  { %420 = vmatprep.subr.bf16.mxu0 %v1821_v24  ;;  %1767 = vmatprep.subr.bf16.mxu1 %v1821_v24 }
  0x2f   :  { %421 = vmatpush1.bf16.msra.mxu0 %v1823_v25  ;;  %1783 = vmatpush1.bf16.msra.mxu1 %v1823_v25 }
  0x30   :  { %422 = vmatprep.subr.bf16.mxu0 %v1824_v26  ;;  %1768 = vmatprep.subr.bf16.mxu1 %v1824_v26 }
  0x33   :  { %423 = vmatpush1.bf16.msra.mxu0 %v1826_v27  ;;  %1784 = vmatpush1.bf16.msra.mxu1 %v1826_v27 }
  0x34   :  { %424 = vmatprep.subr.bf16.mxu0 %v1827_v28  ;;  %1769 = vmatprep.subr.bf16.mxu1 %v1827_v28 }
  0x37   :  { %425 = vmatpush1.bf16.msra.mxu0 %v1829_v29  ;;  %1785 = vmatpush1.bf16.msra.mxu1 %v1829_v29 }
  0x38   :  { %426 = vmatprep.subr.bf16.mxu0 %v1830_v30  ;;  %1770 = vmatprep.subr.bf16.mxu1 %v1830_v30 }
  0x3b   :  { %427 = vmatpush1.bf16.msra.mxu0 %v1832_v31  ;;  %1786 = vmatpush1.bf16.msra.mxu1 %v1832_v31 }
  0x3c   :  { %428 = vmatprep.subr.bf16.mxu0 %v1833_v32  ;;  %1771 = vmatprep.subr.bf16.mxu1 %v1833_v32 }
  0x3f   :  { %429 = vmatpush1.bf16.msra.mxu0 %v1835_v33  ;;  %1787 = vmatpush1.bf16.msra.mxu1 %v1835_v33 }
  0x42   :  { %431 = vmatmul.mubr.bf16.vlgmr.msra.gmra.mrb[0].mxu0 %v2010_v34  ;;  %511 = vmatmul.mubr.bf16.vlgmr.msra.gmra.mrb[0].mxu1 %v2015_v35 }
  0x43   :  { %440 = vmatprep.mubr.bf16.mxu0 %v2020_v36  ;;  %520 = vmatprep.mubr.bf16.mxu1 %v2025_v37 }
  0x4a   :  { %441 = vmatmul.mubr.bf16.gmra.mrb[4].mxu0 %v2034_v38  ;;  %521 = vmatmul.mubr.bf16.gmra.mrb[4].mxu1 %v2039_v39 }
  0x4b   :  { %450 = vmatprep.mubr.bf16.mxu0 %v2044_v40  ;;  %530 = vmatprep.mubr.bf16.mxu1 %v2049_v41 }
  0x52   :  { %451 = vmatmul.mubr.bf16.gmra.mrb[8].mxu0 %v2058_v42  ;;  %531 = vmatmul.mubr.bf16.gmra.mrb[8].mxu1 %v2063_v43 }
  0x53   :  { %460 = vmatprep.mubr.bf16.mxu0 %v2068_v44  ;;  %540 = vmatprep.mubr.bf16.mxu1 %v2073_v45 }
  0x5a   :  { %461 = vmatmul.mubr.bf16.gmra.mrb[12].mxu0 %v2082_v46  ;;  %541 = vmatmul.mubr.bf16.gmra.mrb[12].mxu1 %v2087_v47 }
  0x5b   :  { %470 = vmatprep.mubr.bf16.mxu0 %v2092_v48  ;;  %550 = vmatprep.mubr.bf16.mxu1 %v2097_v49 }
  0x62   :  { %471 = vmatmul.mubr.bf16.gmra.mrb[16].mxu0 %v2106_v50  ;;  %551 = vmatmul.mubr.bf16.gmra.mrb[16].mxu1 %v2111_v51 }
  0x63   :  { %480 = vmatprep.mubr.bf16.mxu0 %v2116_v52  ;;  %560 = vmatprep.mubr.bf16.mxu1 %v2121_v53 }
  0x6a   :  { %481 = vmatmul.mubr.bf16.gmra.mrb[20].mxu0 %v2130_v54  ;;  %561 = vmatmul.mubr.bf16.gmra.mrb[20].mxu1 %v2135_v55 }
  0x6b   :  { %490 = vmatprep.mubr.bf16.mxu0 %v2140_v56  ;;  %570 = vmatprep.mubr.bf16.mxu1 %v2145_v57 }
  0x72   :  { %491 = vmatmul.mubr.bf16.gmra.mrb[24].mxu0 %v2154_v58  ;;  %571 = vmatmul.mubr.bf16.gmra.mrb[24].mxu1 %v2159_v59 }
  0x73   :  { %500 = vmatprep.mubr.bf16.mxu0 %v2164_v60  ;;  %580 = vmatprep.mubr.bf16.mxu1 %v2169_v61 }
  0x7a   :  { %501 = vmatmul.mubr.bf16.gmra.mrb[28].mxu0 %v2178_v62  ;;  %581 = vmatmul.mubr.bf16.gmra.mrb[28].mxu1 %v2183_v63 }
  0x7b   :  { %914 = vmatprep.mubr.bf16.mxu1 %v1941_v13  ;;  %1397 = vmatprep.mubr.bf16.mxu0 %v1941_v13 }
 0x115   :  { %v432_v0 = vpop.f32.mrb[0].mxu0  ;;  %v2189_v1 = vpop.f32.mrb[0].mxu1 }
 0x116   :  { %v434_v2 = vpop.f32.mrb[1].mxu0  ;;  %v2191_v3 = vpop.f32.mrb[1].mxu1 }
 0x117   :  { %v436_v4 = vpop.f32.mrb[2].mxu0  ;;  %v2193_v5 = vpop.f32.mrb[2].mxu1 }
 0x118   :  { %v591_v6 = vpack.c.bf16 %v436_v4, %v432_v0  ;;  %v438_v7 = vpop.f32.mrb[3].mxu0  ;;  %v2197_v9 = vpop.f32.mrb[3].mxu1 }
 0x119   :  { %v592_v10 = vpack.c.bf16 %v438_v7, %v434_v2 }
 0x11b   :  { %882 = vmatprep.subr.bf16.mxu1 %v592_v10 }
 0x11c   :  { %883 = vmatpush1.bf16.msra.mxu1 %v591_v6 }
 0x11d   :  { %v442_v12 = vpop.f32.mrb[4].mxu0  ;;  %v2201_v13 = vpop.f32.mrb[4].mxu1 }
 0x11e   :  { %v444_v14 = vpop.f32.mrb[5].mxu0  ;;  %v2203_v15 = vpop.f32.mrb[5].mxu1 }
 0x11f   :  { %v446_v16 = vpop.f32.mrb[6].mxu0  ;;  %v2205_v18 = vpop.f32.mrb[6].mxu1 }
 0x120   :  { %v593_v19 = vpack.c.bf16 %v446_v16, %v442_v12  ;;  %v448_v20 = vpop.f32.mrb[7].mxu0  ;;  %v2209_v22 = vpop.f32.mrb[7].mxu1 }
 0x121   :  { %v594_v23 = vpack.c.bf16 %v448_v20, %v444_v14 }
 0x123   :  { %884 = vmatprep.subr.bf16.mxu1 %v594_v23 }
 0x124   :  { %885 = vmatpush1.bf16.msra.mxu1 %v593_v19 }
 0x125   :  { %v452_v25 = vpop.f32.mrb[8].mxu0  ;;  %v2213_v26 = vpop.f32.mrb[8].mxu1 }
 0x126   :  { %v454_v27 = vpop.f32.mrb[9].mxu0  ;;  %v2215_v28 = vpop.f32.mrb[9].mxu1 }
 0x127   :  { %v456_v29 = vpop.f32.mrb[10].mxu0  ;;  %v2217_v30 = vpop.f32.mrb[10].mxu1 }
 0x128   :  { %v595_v31 = vpack.c.bf16 %v456_v29, %v452_v25  ;;  %v458_v32 = vpop.f32.mrb[11].mxu0  ;;  %v2221_v0 = vpop.f32.mrb[11].mxu1 }
 0x129   :  { %v596_v2 = vpack.c.bf16 %v458_v32, %v454_v27 }
 0x12b   :  { %886 = vmatprep.subr.bf16.mxu1 %v596_v2 }
 0x12c   :  { %887 = vmatpush1.bf16.msra.mxu1 %v595_v31 }
 0x12d   :  { %v462_v6 = vpop.f32.mrb[12].mxu0  ;;  %v2225_v7 = vpop.f32.mrb[12].mxu1 }
 0x12e   :  { %v464_v10 = vpop.f32.mrb[13].mxu0  ;;  %v2227_v12 = vpop.f32.mrb[13].mxu1 }
 0x12f   :  { %v466_v14 = vpop.f32.mrb[14].mxu0  ;;  %v2229_v16 = vpop.f32.mrb[14].mxu1 }
 0x130   :  { %v597_v19 = vpack.c.bf16 %v466_v14, %v462_v6  ;;  %v468_v20 = vpop.f32.mrb[15].mxu0  ;;  %v2233_v25 = vpop.f32.mrb[15].mxu1 }
 0x131   :  { %v598_v27 = vpack.c.bf16 %v468_v20, %v464_v10 }
 0x133   :  { %888 = vmatprep.subr.bf16.mxu1 %v598_v27 }
 0x134   :  { %889 = vmatpush1.bf16.msra.mxu1 %v597_v19 }
 0x135   :  { %v472_v31 = vpop.f32.mrb[16].mxu0  ;;  %v2237_v32 = vpop.f32.mrb[16].mxu1 }
 0x136   :  { %v474_v2 = vpop.f32.mrb[17].mxu0  ;;  %v554_v33 = vpop.f32.mrb[17].mxu1 }
 0x137   :  { %v476_v4 = vpop.f32.mrb[18].mxu0  ;;  %v556_v21 = vpop.f32.mrb[18].mxu1 }
 0x138   :  { %v599_v6 = vpack.c.bf16 %v476_v4, %v472_v31  ;;  %v478_v14 = vpop.f32.mrb[19].mxu0  ;;  %v615_v24 = vpack.c.bf16 %v556_v21, %v2237_v32  ;;  %v558_v23 = vpop.f32.mrb[19].mxu1 }
 0x139   :  { %v600_v8 = vpack.c.bf16 %v478_v14, %v474_v2  ;;  %v616_v11 = vpack.c.bf16 %v558_v23, %v554_v33 }
 0x13b   :  { %890 = vmatprep.subr.bf16.mxu1 %v600_v8 }
 0x13c   :  { %891 = vmatpush1.bf16.msra.mxu1 %v599_v6 }
 0x13d   :  { %v482_v10 = vpop.f32.mrb[20].mxu0  ;;  %v562_v20 = vpop.f32.mrb[20].mxu1 }
 0x13e   :  { %v484_v27 = vpop.f32.mrb[21].mxu0  ;;  %v564_v19 = vpop.f32.mrb[21].mxu1 }
 0x13f   :  { %v486_v29 = vpop.f32.mrb[22].mxu0  ;;  %v566_v63 = vpop.f32.mrb[22].mxu1 }
 0x140   :  { %v601_v61 = vpack.c.bf16 %v486_v29, %v482_v10  ;;  %v488_v59 = vpop.f32.mrb[23].mxu0  ;;  %v617_v57 = vpack.c.bf16 %v566_v63, %v562_v20  ;;  %v568_v55 = vpop.f32.mrb[23].mxu1 }
 0x141   :  { %v602_v53 = vpack.c.bf16 %v488_v59, %v484_v27  ;;  %v618_v4 = vpack.c.bf16 %v568_v55, %v564_v19 }
 0x143   :  { %892 = vmatprep.subr.bf16.mxu1 %v602_v53 }
 0x144   :  { %893 = vmatpush1.bf16.msra.mxu1 %v601_v61 }
 0x145   :  { %v492_v21 = vpop.f32.mrb[24].mxu0  ;;  %v572_v31 = vpop.f32.mrb[24].mxu1 }
 0x146   :  { %v494_v32 = vpop.f32.mrb[25].mxu0  ;;  %v574_v33 = vpop.f32.mrb[25].mxu1 }
 0x147   :  { %v496_v8 = vpop.f32.mrb[26].mxu0  ;;  %v576_v23 = vpop.f32.mrb[26].mxu1 }
 0x148   :  { %v603_v2 = vpack.c.bf16 %v496_v8, %v492_v21  ;;  %v498_v6 = vpop.f32.mrb[27].mxu0  ;;  %v619_v14 = vpack.c.bf16 %v576_v23, %v572_v31  ;;  %v578_v51 = vpop.f32.mrb[27].mxu1  ;;  %v2554_v21 = vpack.c.bf16 %v2197_v9, %v2191_v3  ;;  %v2557_v31 = vpack.c.bf16 %v2205_v18, %v2201_v13  ;;  %v2565_v9 = vld [vmem:[#allocation7_spill] sm:$0xff]  ;;  %v2567_v13 = vld [vmem:[#allocation9_spill] sm:$0xff] }
 0x149   :  { %v604_v49 = vpack.c.bf16 %v498_v6, %v494_v32  ;;  %v620_v47 = vpack.c.bf16 %v578_v51, %v574_v33  ;;  %v2556_v51 = vpack.c.bf16 %v2209_v22, %v2203_v15  ;;  %v2559_v3 = vpack.c.bf16 %v2217_v30, %v2213_v26  ;;  %v2568_v15 = vld [vmem:[#allocation10_spill] sm:$0xff]  ;;  %v2569_v18 = vld [vmem:[#allocation11_spill] sm:$0xff]  ;;  %v2570_v22 = vld [vmem:[#allocation12_spill] sm:$0xff] }
 0x14a   :  { %v2572_v26 = vld [vmem:[#allocation14_spill] sm:$0xff] }
 0x14b   :  { %894 = vmatprep.subr.bf16.mxu1 %v604_v49  ;;  %v2555_v49 = vpack.c.bf16 %v2193_v5, %v2189_v1  ;;  %v2560_v1 = vpack.c.bf16 %v2233_v25, %v2227_v12  ;;  %v2561_v5 = vpack.c.bf16 %v2229_v16, %v2225_v7 }
 0x14c   :  { %895 = vmatpush1.bf16.msra.mxu1 %v603_v2 }
 0x14d   :  { %v502_v63 = vpop.f32.mrb[28].mxu0  ;;  %v582_v29 = vpop.f32.mrb[28].mxu1 }
 0x14e   :  { %v504_v59 = vpop.f32.mrb[29].mxu0  ;;  %v584_v55 = vpop.f32.mrb[29].mxu1 }
 0x14f   :  { %v506_v53 = vpop.f32.mrb[30].mxu0  ;;  %v586_v61 = vpop.f32.mrb[30].mxu1 }
 0x150   :  { %v605_v10 = vpack.c.bf16 %v506_v53, %v502_v63  ;;  %v508_v20 = vpop.f32.mrb[31].mxu0  ;;  %v621_v27 = vpack.c.bf16 %v586_v61, %v582_v29  ;;  %v588_v19 = vpop.f32.mrb[31].mxu1 }
 0x151   :  { %v606_v45 = vpack.c.bf16 %v508_v20, %v504_v59  ;;  %v622_v43 = vpack.c.bf16 %v588_v19, %v584_v55 }
 0x153   :  { %896 = vmatprep.subr.bf16.mxu1 %v606_v45  ;;  %v2558_v45 = vpack.c.bf16 %v2221_v0, %v2215_v28 }
 0x154   :  { %897 = vmatpush1.bf16.msra.mxu1 %v605_v10 }
 0x155   :  { %898 = vmatprep.subr.bf16.mxu1 %v2554_v21 }
 0x158   :  { %899 = vmatpush1.bf16.msra.mxu1 %v2555_v49 }
 0x159   :  { %900 = vmatprep.subr.bf16.mxu1 %v2556_v51 }
 0x15c   :  { %901 = vmatpush1.bf16.msra.mxu1 %v2557_v31 }
 0x15d   :  { %902 = vmatprep.subr.bf16.mxu1 %v2558_v45 }
 0x160   :  { %903 = vmatpush1.bf16.msra.mxu1 %v2559_v3 }
 0x161   :  { %904 = vmatprep.subr.bf16.mxu1 %v2560_v1 }
 0x164   :  { %905 = vmatpush1.bf16.msra.mxu1 %v2561_v5 }
 0x165   :  { %906 = vmatprep.subr.bf16.mxu1 %v616_v11  ;;  %v2566_v11 = vld [vmem:[#allocation8_spill] sm:$0xff] }
 0x168   :  { %907 = vmatpush1.bf16.msra.mxu1 %v615_v24  ;;  %v2571_v24 = vld [vmem:[#allocation13_spill] sm:$0xff] }
 0x169   :  { %908 = vmatprep.subr.bf16.mxu1 %v618_v4 }
 0x16c   :  { %909 = vmatpush1.bf16.msra.mxu1 %v617_v57  ;;  %v2564_v57 = vld [vmem:[#allocation6_spill] sm:$0xff] }
 0x16d   :  { %910 = vmatprep.subr.bf16.mxu1 %v620_v47  ;;  %v2563_v47 = vld [vmem:[#allocation5_spill] sm:$0xff] }
 0x170   :  { %911 = vmatpush1.bf16.msra.mxu1 %v619_v14 }
 0x171   :  { %912 = vmatprep.subr.bf16.mxu1 %v622_v43  ;;  %v2562_v43 = vld [vmem:[#allocation4_spill] sm:$0xff] }
 0x174   :  { %913 = vmatpush1.bf16.msra.mxu1 %v621_v27 }
 0x177   :  { %915 = vmatmul.mubr.bf16.vlgmr.msra.gmra.mrb[32].mxu1 %v2010_v34 }
 0x178   :  { %924 = vmatprep.mubr.bf16.mxu1 %v2020_v36 }
 0x17f   :  { %925 = vmatmul.mubr.bf16.gmra.mrb[36].mxu1 %v2034_v38 }
 0x180   :  { %934 = vmatprep.mubr.bf16.mxu1 %v2044_v40 }
 0x187   :  { %935 = vmatmul.mubr.bf16.gmra.mrb[40].mxu1 %v2058_v42 }
 0x188   :  { %944 = vmatprep.mubr.bf16.mxu1 %v2068_v44 }
 0x18f   :  { %945 = vmatmul.mubr.bf16.gmra.mrb[44].mxu1 %v2082_v46 }
 0x190   :  { %954 = vmatprep.mubr.bf16.mxu1 %v2092_v48 }
 0x197   :  { %955 = vmatmul.mubr.bf16.gmra.mrb[48].mxu1 %v2106_v50 }
 0x198   :  { %964 = vmatprep.mubr.bf16.mxu1 %v2116_v52 }
 0x19f   :  { %965 = vmatmul.mubr.bf16.gmra.mrb[52].mxu1 %v2130_v54 }
 0x1a0   :  { %974 = vmatprep.mubr.bf16.mxu1 %v2140_v56 }
 0x1a7   :  { %975 = vmatmul.mubr.bf16.gmra.mrb[56].mxu1 %v2154_v58 }
 0x1a8   :  { %984 = vmatprep.mubr.bf16.mxu1 %v2164_v60 }
 0x1af   :  { %985 = vmatmul.mubr.bf16.gmra.mrb[60].mxu1 %v2178_v62 }
 0x1b0   :  { %994 = vmatprep.mubr.bf16.mxu1 %v1956_v17 }
 0x1b7   :  { %995 = vmatmul.mubr.bf16.gmra.mrb[64].mxu1 %v2015_v35 }
 0x1b8   :  { %1004 = vmatprep.mubr.bf16.mxu1 %v2025_v37 }
 0x1bf   :  { %1005 = vmatmul.mubr.bf16.gmra.mrb[68].mxu1 %v2039_v39 }
 0x1c0   :  { %1014 = vmatprep.mubr.bf16.mxu1 %v2049_v41 }
 0x1c7   :  { %1015 = vmatmul.mubr.bf16.gmra.mrb[72].mxu1 %v2562_v43 }
 0x1c8   :  { %1024 = vmatprep.mubr.bf16.mxu1 %v2563_v47 }
 0x1cf   :  { %1025 = vmatmul.mubr.bf16.gmra.mrb[76].mxu1 %v2564_v57 }
 0x1d0   :  { %1034 = vmatprep.mubr.bf16.mxu1 %v2565_v9 }
 0x1d7   :  { %1035 = vmatmul.mubr.bf16.gmra.mrb[80].mxu1 %v2566_v11 }
 0x1d8   :  { %1044 = vmatprep.mubr.bf16.mxu1 %v2567_v13 }
 0x1df   :  { %1045 = vmatmul.mubr.bf16.gmra.mrb[84].mxu1 %v2568_v15 }
 0x1e0   :  { %1054 = vmatprep.mubr.bf16.mxu1 %v2569_v18 }
 0x1e7   :  { %1055 = vmatmul.mubr.bf16.gmra.mrb[88].mxu1 %v2570_v22 }
 0x1e8   :  { %1064 = vmatprep.mubr.bf16.mxu1 %v2571_v24 }
 0x1ef   :  { %1065 = vmatmul.mubr.bf16.gmra.mrb[92].mxu1 %v2572_v26 }
 0x24a   :  { %v916_v28 = vpop.f32.mrb[32].mxu1 }
 0x24b   :  { %v918_v30 = vpop.f32.mrb[33].mxu1 }
 0x24c   :  { %v920_v0 = vpop.f32.mrb[34].mxu1 }
 0x24d   :  { %v1075_v7 = vpack.c.bf16 %v920_v0, %v916_v28  ;;  %v922_v12 = vpop.f32.mrb[35].mxu1 }
 0x24e   :  { %v1076_v16 = vpack.c.bf16 %v922_v12, %v918_v30 }
 0x250   :  { %1365 = vmatprep.subr.bf16.mxu0 %v1076_v16 }
 0x251   :  { %1366 = vmatpush1.bf16.msra.mxu0 %v1075_v7 }
 0x252   :  { %v926_v25 = vpop.f32.mrb[36].mxu1 }
 0x253   :  { %v928_v4 = vpop.f32.mrb[37].mxu1 }
 0x254   :  { %v930_v32 = vpop.f32.mrb[38].mxu1 }
 0x255   :  { %v1077_v33 = vpack.c.bf16 %v930_v32, %v926_v25  ;;  %v932_v8 = vpop.f32.mrb[39].mxu1 }
 0x256   :  { %v1078_v23 = vpack.c.bf16 %v932_v8, %v928_v4 }
 0x258   :  { %1367 = vmatprep.subr.bf16.mxu0 %v1078_v23 }
 0x259   :  { %1368 = vmatpush1.bf16.msra.mxu0 %v1077_v33 }
 0x25a   :  { %v936_v2 = vpop.f32.mrb[40].mxu1 }
 0x25b   :  { %v938_v6 = vpop.f32.mrb[41].mxu1 }
 0x25c   :  { %v940_v14 = vpop.f32.mrb[42].mxu1 }
 0x25d   :  { %v1079_v63 = vpack.c.bf16 %v940_v14, %v936_v2  ;;  %v942_v29 = vpop.f32.mrb[43].mxu1 }
 0x25e   :  { %v1080_v59 = vpack.c.bf16 %v942_v29, %v938_v6 }
 0x260   :  { %1369 = vmatprep.subr.bf16.mxu0 %v1080_v59 }
 0x261   :  { %1370 = vmatpush1.bf16.msra.mxu0 %v1079_v63 }
 0x262   :  { %v946_v55 = vpop.f32.mrb[44].mxu1 }
 0x263   :  { %v948_v53 = vpop.f32.mrb[45].mxu1 }
 0x264   :  { %v950_v61 = vpop.f32.mrb[46].mxu1 }
 0x265   :  { %v1081_v10 = vpack.c.bf16 %v950_v61, %v946_v55  ;;  %v952_v20 = vpop.f32.mrb[47].mxu1 }
 0x266   :  { %v1082_v27 = vpack.c.bf16 %v952_v20, %v948_v53 }
 0x268   :  { %1371 = vmatprep.subr.bf16.mxu0 %v1082_v27 }
 0x269   :  { %1372 = vmatpush1.bf16.msra.mxu0 %v1081_v10 }
 0x26a   :  { %v956_v19 = vpop.f32.mrb[48].mxu1 }
 0x26b   :  { %v958_v21 = vpop.f32.mrb[49].mxu1 }
 0x26c   :  { %v960_v49 = vpop.f32.mrb[50].mxu1 }
 0x26d   :  { %v1083_v51 = vpack.c.bf16 %v960_v49, %v956_v19  ;;  %v962_v31 = vpop.f32.mrb[51].mxu1 }
 0x26e   :  { %v1084_v45 = vpack.c.bf16 %v962_v31, %v958_v21 }
 0x270   :  { %1373 = vmatprep.subr.bf16.mxu0 %v1084_v45 }
 0x271   :  { %1374 = vmatpush1.bf16.msra.mxu0 %v1083_v51 }
 0x272   :  { %v966_v3 = vpop.f32.mrb[52].mxu1 }
 0x273   :  { %v968_v1 = vpop.f32.mrb[53].mxu1 }
 0x274   :  { %v970_v5 = vpop.f32.mrb[54].mxu1 }
 0x275   :  { %v1085_v28 = vpack.c.bf16 %v970_v5, %v966_v3  ;;  %v972_v30 = vpop.f32.mrb[55].mxu1 }
 0x276   :  { %v1086_v0 = vpack.c.bf16 %v972_v30, %v968_v1 }
 0x278   :  { %1375 = vmatprep.subr.bf16.mxu0 %v1086_v0 }
 0x279   :  { %1376 = vmatpush1.bf16.msra.mxu0 %v1085_v28 }
 0x27a   :  { %v976_v7 = vpop.f32.mrb[56].mxu1 }
 0x27b   :  { %v978_v12 = vpop.f32.mrb[57].mxu1 }
 0x27c   :  { %v980_v16 = vpop.f32.mrb[58].mxu1 }
 0x27d   :  { %v1087_v25 = vpack.c.bf16 %v980_v16, %v976_v7  ;;  %v982_v4 = vpop.f32.mrb[59].mxu1 }
 0x27e   :  { %v1088_v32 = vpack.c.bf16 %v982_v4, %v978_v12 }
 0x280   :  { %1377 = vmatprep.subr.bf16.mxu0 %v1088_v32 }
 0x281   :  { %1378 = vmatpush1.bf16.msra.mxu0 %v1087_v25 }
 0x282   :  { %v986_v33 = vpop.f32.mrb[60].mxu1 }
 0x283   :  { %v988_v8 = vpop.f32.mrb[61].mxu1 }
 0x284   :  { %v990_v23 = vpop.f32.mrb[62].mxu1 }
 0x285   :  { %v1089_v2 = vpack.c.bf16 %v990_v23, %v986_v33  ;;  %v992_v6 = vpop.f32.mrb[63].mxu1 }
 0x286   :  { %v1090_v14 = vpack.c.bf16 %v992_v6, %v988_v8 }
 0x288   :  { %1379 = vmatprep.subr.bf16.mxu0 %v1090_v14 }
 0x289   :  { %1380 = vmatpush1.bf16.msra.mxu0 %v1089_v2 }
 0x28a   :  { %v996_v63 = vpop.f32.mrb[64].mxu1 }
 0x28b   :  { %v998_v29 = vpop.f32.mrb[65].mxu1 }
 0x28c   :  { %v1000_v59 = vpop.f32.mrb[66].mxu1 }
 0x28d   :  { %v1091_v55 = vpack.c.bf16 %v1000_v59, %v996_v63  ;;  %v1002_v53 = vpop.f32.mrb[67].mxu1 }
 0x28e   :  { %v1092_v61 = vpack.c.bf16 %v1002_v53, %v998_v29 }
 0x290   :  { %1381 = vmatprep.subr.bf16.mxu0 %v1092_v61 }
 0x291   :  { %1382 = vmatpush1.bf16.msra.mxu0 %v1091_v55 }
 0x292   :  { %v1006_v10 = vpop.f32.mrb[68].mxu1 }
 0x293   :  { %v1008_v20 = vpop.f32.mrb[69].mxu1 }
 0x294   :  { %v1010_v27 = vpop.f32.mrb[70].mxu1 }
 0x295   :  { %v1093_v19 = vpack.c.bf16 %v1010_v27, %v1006_v10  ;;  %v1012_v21 = vpop.f32.mrb[71].mxu1 }
 0x296   :  { %v1094_v49 = vpack.c.bf16 %v1012_v21, %v1008_v20 }
 0x298   :  { %1383 = vmatprep.subr.bf16.mxu0 %v1094_v49 }
 0x299   :  { %1384 = vmatpush1.bf16.msra.mxu0 %v1093_v19 }
 0x29a   :  { %v1016_v51 = vpop.f32.mrb[72].mxu1 }
 0x29b   :  { %v1018_v31 = vpop.f32.mrb[73].mxu1 }
 0x29c   :  { %v1020_v45 = vpop.f32.mrb[74].mxu1 }
 0x29d   :  { %v1095_v3 = vpack.c.bf16 %v1020_v45, %v1016_v51  ;;  %v1022_v1 = vpop.f32.mrb[75].mxu1 }
 0x29e   :  { %v1096_v5 = vpack.c.bf16 %v1022_v1, %v1018_v31 }
 0x2a0   :  { %1385 = vmatprep.subr.bf16.mxu0 %v1096_v5 }
 0x2a1   :  { %1386 = vmatpush1.bf16.msra.mxu0 %v1095_v3 }
 0x2a2   :  { %v1026_v28 = vpop.f32.mrb[76].mxu1 }
 0x2a3   :  { %v1028_v30 = vpop.f32.mrb[77].mxu1 }
 0x2a4   :  { %v1030_v0 = vpop.f32.mrb[78].mxu1 }
 0x2a5   :  { %v1097_v7 = vpack.c.bf16 %v1030_v0, %v1026_v28  ;;  %v1032_v12 = vpop.f32.mrb[79].mxu1 }
 0x2a6   :  { %v1098_v16 = vpack.c.bf16 %v1032_v12, %v1028_v30 }
 0x2a8   :  { %1387 = vmatprep.subr.bf16.mxu0 %v1098_v16 }
 0x2a9   :  { %1388 = vmatpush1.bf16.msra.mxu0 %v1097_v7 }
 0x2aa   :  { %v1036_v25 = vpop.f32.mrb[80].mxu1 }
 0x2ab   :  { %v1038_v4 = vpop.f32.mrb[81].mxu1 }
 0x2ac   :  { %v1040_v32 = vpop.f32.mrb[82].mxu1 }
 0x2ad   :  { %v1099_v33 = vpack.c.bf16 %v1040_v32, %v1036_v25  ;;  %v1042_v8 = vpop.f32.mrb[83].mxu1 }
 0x2ae   :  { %v1100_v23 = vpack.c.bf16 %v1042_v8, %v1038_v4 }
 0x2b0   :  { %1389 = vmatprep.subr.bf16.mxu0 %v1100_v23 }
 0x2b1   :  { %1390 = vmatpush1.bf16.msra.mxu0 %v1099_v33 }
 0x2b2   :  { %v1046_v2 = vpop.f32.mrb[84].mxu1 }
 0x2b3   :  { %v1048_v6 = vpop.f32.mrb[85].mxu1 }
 0x2b4   :  { %v1050_v14 = vpop.f32.mrb[86].mxu1 }
 0x2b5   :  { %v1101_v63 = vpack.c.bf16 %v1050_v14, %v1046_v2  ;;  %v1052_v29 = vpop.f32.mrb[87].mxu1 }
 0x2b6   :  { %v1102_v59 = vpack.c.bf16 %v1052_v29, %v1048_v6 }
 0x2b8   :  { %1391 = vmatprep.subr.bf16.mxu0 %v1102_v59 }
 0x2b9   :  { %1392 = vmatpush1.bf16.msra.mxu0 %v1101_v63 }
 0x2ba   :  { %v1056_v55 = vpop.f32.mrb[88].mxu1 }
 0x2bb   :  { %v1058_v53 = vpop.f32.mrb[89].mxu1 }
 0x2bc   :  { %v1060_v61 = vpop.f32.mrb[90].mxu1 }
 0x2bd   :  { %v1103_v10 = vpack.c.bf16 %v1060_v61, %v1056_v55  ;;  %v1062_v20 = vpop.f32.mrb[91].mxu1 }
 0x2be   :  { %v1104_v27 = vpack.c.bf16 %v1062_v20, %v1058_v53 }
 0x2c0   :  { %1393 = vmatprep.subr.bf16.mxu0 %v1104_v27 }
 0x2c1   :  { %1394 = vmatpush1.bf16.msra.mxu0 %v1103_v10 }
 0x2c2   :  { %v1066_v19 = vpop.f32.mrb[92].mxu1 }
 0x2c3   :  { %v1068_v21 = vpop.f32.mrb[93].mxu1 }
 0x2c4   :  { %v1070_v49 = vpop.f32.mrb[94].mxu1 }
 0x2c5   :  { %v1105_v51 = vpack.c.bf16 %v1070_v49, %v1066_v19  ;;  %v1072_v31 = vpop.f32.mrb[95].mxu1 }
 0x2c6   :  { %v1106_v45 = vpack.c.bf16 %v1072_v31, %v1068_v21 }
 0x2c8   :  { %1395 = vmatprep.subr.bf16.mxu0 %v1106_v45 }
 0x2c9   :  { %1396 = vmatpush1.bf16.msra.mxu0 %v1105_v51 }
 0x2cc   :  { %1398 = vmatmul.mubr.bf16.vlgmr.msra.gmra.mrb[32].mxu0 %v2010_v34 }
 0x2cd   :  { %1407 = vmatprep.mubr.bf16.mxu0 %v2020_v36 }
 0x2d4   :  { %1408 = vmatmul.mubr.bf16.gmra.mrb[36].mxu0 %v2034_v38 }
 0x2d5   :  { %1417 = vmatprep.mubr.bf16.mxu0 %v2044_v40 }
 0x2dc   :  { %1418 = vmatmul.mubr.bf16.gmra.mrb[40].mxu0 %v2058_v42 }
 0x2dd   :  { %1427 = vmatprep.mubr.bf16.mxu0 %v2068_v44 }
 0x2e4   :  { %1428 = vmatmul.mubr.bf16.gmra.mrb[44].mxu0 %v2082_v46 }
 0x2e5   :  { %1437 = vmatprep.mubr.bf16.mxu0 %v2092_v48 }
 0x2ec   :  { %1438 = vmatmul.mubr.bf16.gmra.mrb[48].mxu0 %v2106_v50 }
 0x2ed   :  { %1447 = vmatprep.mubr.bf16.mxu0 %v2116_v52 }
 0x2f4   :  { %1448 = vmatmul.mubr.bf16.gmra.mrb[52].mxu0 %v2130_v54 }
 0x2f5   :  { %1457 = vmatprep.mubr.bf16.mxu0 %v2140_v56 }
 0x2fc   :  { %1458 = vmatmul.mubr.bf16.gmra.mrb[56].mxu0 %v2154_v58 }
 0x2fd   :  { %1467 = vmatprep.mubr.bf16.mxu0 %v2164_v60 }
 0x304   :  { %1468 = vmatmul.mubr.bf16.gmra.mrb[60].mxu0 %v2178_v62 }
 0x305   :  { %1477 = vmatprep.mubr.bf16.mxu0 %v1956_v17 }
 0x30c   :  { %1478 = vmatmul.mubr.bf16.gmra.mrb[64].mxu0 %v2015_v35 }
 0x30d   :  { %1487 = vmatprep.mubr.bf16.mxu0 %v2025_v37 }
 0x314   :  { %1488 = vmatmul.mubr.bf16.gmra.mrb[68].mxu0 %v2039_v39 }
 0x315   :  { %1497 = vmatprep.mubr.bf16.mxu0 %v2049_v41 }
 0x31c   :  { %1498 = vmatmul.mubr.bf16.gmra.mrb[72].mxu0 %v2562_v43 }
 0x31d   :  { %1507 = vmatprep.mubr.bf16.mxu0 %v2563_v47 }
 0x324   :  { %1508 = vmatmul.mubr.bf16.gmra.mrb[76].mxu0 %v2564_v57 }
 0x325   :  { %1517 = vmatprep.mubr.bf16.mxu0 %v2565_v9 }
 0x32c   :  { %1518 = vmatmul.mubr.bf16.gmra.mrb[80].mxu0 %v2566_v11 }
 0x32d   :  { %1527 = vmatprep.mubr.bf16.mxu0 %v2567_v13 }
 0x334   :  { %1528 = vmatmul.mubr.bf16.gmra.mrb[84].mxu0 %v2568_v15 }
 0x335   :  { %1537 = vmatprep.mubr.bf16.mxu0 %v2569_v18 }
 0x33c   :  { %1538 = vmatmul.mubr.bf16.gmra.mrb[88].mxu0 %v2570_v22 }
 0x33d   :  { %1547 = vmatprep.mubr.bf16.mxu0 %v2571_v24 }
 0x344   :  { %1548 = vmatmul.mubr.bf16.gmra.mrb[92].mxu0 %v2572_v26 }
 0x39f   :  { %v1399_v17 = vpop.f32.mrb[32].mxu0 }
 0x3a0   :  { %1560 = vst [vmem:[%s2520_s2] sm:$0xff] %v1399_v17  ;;  %v1401_v34 = vpop.f32.mrb[33].mxu0 }
 0x3a1   :  { %1561 = vst [vmem:[%s2520_s2 + $0x8] sm:$0xff] %v1401_v34  ;;  %v1403_v35 = vpop.f32.mrb[34].mxu0 }
 0x3a2   :  { %1562 = vst [vmem:[%s2520_s2 + $0x10] sm:$0xff] %v1403_v35  ;;  %v1405_v36 = vpop.f32.mrb[35].mxu0 }
 0x3a3   :  { %1563 = vst [vmem:[%s2520_s2 + $0x18] sm:$0xff] %v1405_v36 }
 0x3a7   :  { %v1409_v37 = vpop.f32.mrb[36].mxu0 }
 0x3a8   :  { %1564 = vst [vmem:[%s2520_s2 + $0x20] sm:$0xff] %v1409_v37  ;;  %v1411_v38 = vpop.f32.mrb[37].mxu0 }
 0x3a9   :  { %1565 = vst [vmem:[%s2520_s2 + $0x28] sm:$0xff] %v1411_v38  ;;  %v1413_v39 = vpop.f32.mrb[38].mxu0 }
 0x3aa   :  { %1566 = vst [vmem:[%s2520_s2 + $0x30] sm:$0xff] %v1413_v39  ;;  %v1415_v40 = vpop.f32.mrb[39].mxu0 }
 0x3ab   :  { %1567 = vst [vmem:[%s2520_s2 + $0x38] sm:$0xff] %v1415_v40 }
 0x3af   :  { %v1419_v41 = vpop.f32.mrb[40].mxu0 }
 0x3b0   :  { %1568 = vst [vmem:[%s2520_s2 + $0x40] sm:$0xff] %v1419_v41  ;;  %v1421_v42 = vpop.f32.mrb[41].mxu0 }
 0x3b1   :  { %1569 = vst [vmem:[%s2520_s2 + $0x48] sm:$0xff] %v1421_v42  ;;  %v1423_v44 = vpop.f32.mrb[42].mxu0 }
 0x3b2   :  { %1570 = vst [vmem:[%s2520_s2 + $0x50] sm:$0xff] %v1423_v44  ;;  %v1425_v46 = vpop.f32.mrb[43].mxu0 }
 0x3b3   :  { %1571 = vst [vmem:[%s2520_s2 + $0x58] sm:$0xff] %v1425_v46 }
 0x3b7   :  { %v1429_v48 = vpop.f32.mrb[44].mxu0 }
 0x3b8   :  { %1572 = vst [vmem:[%s2520_s2 + $0x60] sm:$0xff] %v1429_v48  ;;  %v1431_v50 = vpop.f32.mrb[45].mxu0 }
 0x3b9   :  { %1573 = vst [vmem:[%s2520_s2 + $0x68] sm:$0xff] %v1431_v50  ;;  %v1433_v52 = vpop.f32.mrb[46].mxu0 }
 0x3ba   :  { %1574 = vst [vmem:[%s2520_s2 + $0x70] sm:$0xff] %v1433_v52  ;;  %v1435_v54 = vpop.f32.mrb[47].mxu0 }
 0x3bb   :  { %1575 = vst [vmem:[%s2520_s2 + $0x78] sm:$0xff] %v1435_v54 }
 0x3bf   :  { %v1439_v56 = vpop.f32.mrb[48].mxu0 }
 0x3c0   :  { %1576 = vst [vmem:[%s2520_s2 + $0x80] sm:$0xff] %v1439_v56  ;;  %v1441_v58 = vpop.f32.mrb[49].mxu0 }
 0x3c1   :  { %1577 = vst [vmem:[%s2520_s2 + $0x88] sm:$0xff] %v1441_v58  ;;  %v1443_v60 = vpop.f32.mrb[50].mxu0 }
 0x3c2   :  { %1578 = vst [vmem:[%s2520_s2 + $0x90] sm:$0xff] %v1443_v60  ;;  %v1445_v62 = vpop.f32.mrb[51].mxu0 }
 0x3c3   :  { %1579 = vst [vmem:[%s2520_s2 + $0x98] sm:$0xff] %v1445_v62 }
 0x3c7   :  { %v1449_v43 = vpop.f32.mrb[52].mxu0 }
 0x3c8   :  { %1580 = vst [vmem:[%s2520_s2 + $0xa0] sm:$0xff] %v1449_v43  ;;  %v1451_v47 = vpop.f32.mrb[53].mxu0 }
 0x3c9   :  { %1581 = vst [vmem:[%s2520_s2 + $0xa8] sm:$0xff] %v1451_v47  ;;  %v1453_v57 = vpop.f32.mrb[54].mxu0 }
 0x3ca   :  { %1582 = vst [vmem:[%s2520_s2 + $0xb0] sm:$0xff] %v1453_v57  ;;  %v1455_v9 = vpop.f32.mrb[55].mxu0 }
 0x3cb   :  { %1583 = vst [vmem:[%s2520_s2 + $0xb8] sm:$0xff] %v1455_v9 }
 0x3cf   :  { %v1459_v11 = vpop.f32.mrb[56].mxu0 }
 0x3d0   :  { %1584 = vst [vmem:[%s2520_s2 + $0xc0] sm:$0xff] %v1459_v11  ;;  %v1461_v13 = vpop.f32.mrb[57].mxu0 }
 0x3d1   :  { %1585 = vst [vmem:[%s2520_s2 + $0xc8] sm:$0xff] %v1461_v13  ;;  %v1463_v15 = vpop.f32.mrb[58].mxu0 }
 0x3d2   :  { %1586 = vst [vmem:[%s2520_s2 + $0xd0] sm:$0xff] %v1463_v15  ;;  %v1465_v18 = vpop.f32.mrb[59].mxu0 }
 0x3d3   :  { %1587 = vst [vmem:[%s2520_s2 + $0xd8] sm:$0xff] %v1465_v18 }
 0x3d7   :  { %v1469_v22 = vpop.f32.mrb[60].mxu0 }
 0x3d8   :  { %1588 = vst [vmem:[%s2520_s2 + $0xe0] sm:$0xff] %v1469_v22  ;;  %v1471_v24 = vpop.f32.mrb[61].mxu0 }
 0x3d9   :  { %1589 = vst [vmem:[%s2520_s2 + $0xe8] sm:$0xff] %v1471_v24  ;;  %v1473_v26 = vpop.f32.mrb[62].mxu0 }
 0x3da   :  { %1590 = vst [vmem:[%s2520_s2 + $0xf0] sm:$0xff] %v1473_v26  ;;  %v1475_v3 = vpop.f32.mrb[63].mxu0 }
 0x3db   :  { %1591 = vst [vmem:[%s2520_s2 + $0xf8] sm:$0xff] %v1475_v3 }
 0x3df   :  { %v1479_v1 = vpop.f32.mrb[64].mxu0 }
 0x3e0   :  { %1592 = vst [vmem:[%s2520_s2 + $0x100] sm:$0xff] %v1479_v1  ;;  %v1481_v5 = vpop.f32.mrb[65].mxu0 }
 0x3e1   :  { %1593 = vst [vmem:[%s2520_s2 + $0x108] sm:$0xff] %v1481_v5  ;;  %v1483_v28 = vpop.f32.mrb[66].mxu0 }
 0x3e2   :  { %1594 = vst [vmem:[%s2520_s2 + $0x110] sm:$0xff] %v1483_v28  ;;  %v1485_v30 = vpop.f32.mrb[67].mxu0 }
 0x3e3   :  { %1595 = vst [vmem:[%s2520_s2 + $0x118] sm:$0xff] %v1485_v30 }
 0x3e7   :  { %v1489_v0 = vpop.f32.mrb[68].mxu0 }
 0x3e8   :  { %1596 = vst [vmem:[%s2520_s2 + $0x120] sm:$0xff] %v1489_v0  ;;  %v1491_v7 = vpop.f32.mrb[69].mxu0 }
 0x3e9   :  { %1597 = vst [vmem:[%s2520_s2 + $0x128] sm:$0xff] %v1491_v7  ;;  %v1493_v12 = vpop.f32.mrb[70].mxu0 }
 0x3ea   :  { %1598 = vst [vmem:[%s2520_s2 + $0x130] sm:$0xff] %v1493_v12  ;;  %v1495_v16 = vpop.f32.mrb[71].mxu0 }
 0x3eb   :  { %1599 = vst [vmem:[%s2520_s2 + $0x138] sm:$0xff] %v1495_v16 }
 0x3ef   :  { %v1499_v25 = vpop.f32.mrb[72].mxu0 }
 0x3f0   :  { %1600 = vst [vmem:[%s2520_s2 + $0x140] sm:$0xff] %v1499_v25  ;;  %v1501_v4 = vpop.f32.mrb[73].mxu0 }
 0x3f1   :  { %1601 = vst [vmem:[%s2520_s2 + $0x148] sm:$0xff] %v1501_v4  ;;  %v1503_v32 = vpop.f32.mrb[74].mxu0 }
 0x3f2   :  { %1602 = vst [vmem:[%s2520_s2 + $0x150] sm:$0xff] %v1503_v32  ;;  %v1505_v33 = vpop.f32.mrb[75].mxu0 }
 0x3f3   :  { %1603 = vst [vmem:[%s2520_s2 + $0x158] sm:$0xff] %v1505_v33 }
 0x3f7   :  { %v1509_v8 = vpop.f32.mrb[76].mxu0 }
 0x3f8   :  { %1604 = vst [vmem:[%s2520_s2 + $0x160] sm:$0xff] %v1509_v8  ;;  %v1511_v23 = vpop.f32.mrb[77].mxu0 }
 0x3f9   :  { %1605 = vst [vmem:[%s2520_s2 + $0x168] sm:$0xff] %v1511_v23  ;;  %v1513_v2 = vpop.f32.mrb[78].mxu0 }
 0x3fa   :  { %1606 = vst [vmem:[%s2520_s2 + $0x170] sm:$0xff] %v1513_v2  ;;  %v1515_v6 = vpop.f32.mrb[79].mxu0 }
 0x3fb   :  { %1607 = vst [vmem:[%s2520_s2 + $0x178] sm:$0xff] %v1515_v6 }
 0x3ff   :  { %v1519_v14 = vpop.f32.mrb[80].mxu0 }
 0x400   :  { %1608 = vst [vmem:[%s2520_s2 + $0x180] sm:$0xff] %v1519_v14  ;;  %v1521_v63 = vpop.f32.mrb[81].mxu0 }
 0x401   :  { %1609 = vst [vmem:[%s2520_s2 + $0x188] sm:$0xff] %v1521_v63  ;;  %v1523_v29 = vpop.f32.mrb[82].mxu0 }
 0x402   :  { %1610 = vst [vmem:[%s2520_s2 + $0x190] sm:$0xff] %v1523_v29  ;;  %v1525_v59 = vpop.f32.mrb[83].mxu0 }
 0x403   :  { %1611 = vst [vmem:[%s2520_s2 + $0x198] sm:$0xff] %v1525_v59 }
 0x407   :  { %v1529_v55 = vpop.f32.mrb[84].mxu0 }
 0x408   :  { %1612 = vst [vmem:[%s2520_s2 + $0x1a0] sm:$0xff] %v1529_v55  ;;  %v1531_v53 = vpop.f32.mrb[85].mxu0 }
 0x409   :  { %1613 = vst [vmem:[%s2520_s2 + $0x1a8] sm:$0xff] %v1531_v53  ;;  %v1533_v61 = vpop.f32.mrb[86].mxu0 }
 0x40a   :  { %1614 = vst [vmem:[%s2520_s2 + $0x1b0] sm:$0xff] %v1533_v61  ;;  %v1535_v10 = vpop.f32.mrb[87].mxu0 }
 0x40b   :  { %1615 = vst [vmem:[%s2520_s2 + $0x1b8] sm:$0xff] %v1535_v10 }
 0x40f   :  { %v1539_v20 = vpop.f32.mrb[88].mxu0 }
 0x410   :  { %1616 = vst [vmem:[%s2520_s2 + $0x1c0] sm:$0xff] %v1539_v20  ;;  %v1541_v27 = vpop.f32.mrb[89].mxu0 }
 0x411   :  { %1617 = vst [vmem:[%s2520_s2 + $0x1c8] sm:$0xff] %v1541_v27  ;;  %v1543_v19 = vpop.f32.mrb[90].mxu0 }
 0x412   :  { %1618 = vst [vmem:[%s2520_s2 + $0x1d0] sm:$0xff] %v1543_v19  ;;  %v1545_v21 = vpop.f32.mrb[91].mxu0 }
 0x413   :  { %1619 = vst [vmem:[%s2520_s2 + $0x1d8] sm:$0xff] %v1545_v21 }
 0x417   :  { %v1549_v49 = vpop.f32.mrb[92].mxu0 }
 0x418   :  { %1620 = vst [vmem:[%s2520_s2 + $0x1e0] sm:$0xff] %v1549_v49  ;;  %v1551_v51 = vpop.f32.mrb[93].mxu0 }
 0x419   :  { %1621 = vst [vmem:[%s2520_s2 + $0x1e8] sm:$0xff] %v1551_v51  ;;  %v1553_v31 = vpop.f32.mrb[94].mxu0 }
 0x41a   :  { %1622 = vst [vmem:[%s2520_s2 + $0x1f0] sm:$0xff] %v1553_v31  ;;  %v1555_v45 = vpop.f32.mrb[95].mxu0 }
 0x41b   :  { %1623 = vst [vmem:[%s2520_s2 + $0x1f8] sm:$0xff] %v1555_v45 }

</bundles_post_ra>
